<compile_context>
chip_gen: v5e
topology: v5e:2x2
jax: 0.10.0
libtpu: 0.0.40
codegen_flags: <defaults>
</compile_context>

<pallas_src>
import functools

import numpy as np
import jax
import jax.numpy as jnp
from jax import lax
from jax.experimental import pallas as pl
from jax.experimental.pallas import tpu as pltpu

_LEAKY_SLOPE = 0.01                     # nn.LeakyReLU() default


# ---------------------------------------------------------------------------
# Per-generation tuning knobs (derived from hardware, with safe fallbacks).
# ---------------------------------------------------------------------------
def _derive_vmem_limit():
    """Scoped-VMEM budget ~= half of physical capacity (v5e/v6e 128MiB -> 64MiB,
    v7x 64MiB -> 32MiB), capped at 96 MiB."""
    try:
        info = pltpu.get_tpu_info()
        for name in ("vmem_capacity_bytes", "vmem_bytes", "vmem_size_bytes"):
            cap = getattr(info, name, None)
            if isinstance(cap, int) and cap > 0:
                return int(min(cap // 2, 96 * 1024 * 1024))
    except Exception:
        pass
    return 32 * 1024 * 1024             # safe default (fits v7x's 64 MiB VMEM)


def _detect_num_tensorcores():
    try:
        info = pltpu.get_tpu_info()
        for name in ("num_cores", "core_count", "tensorcore_count",
                     "num_tensorcores", "cores_per_chip"):
            v = getattr(info, name, None)
            if isinstance(v, int) and v > 0:
                return v
    except Exception:
        pass
    return 1


_VMEM_LIMIT = _derive_vmem_limit()
_NUM_TC = _detect_num_tensorcores()


def _dim_semantics(grid_b):
    # v7x has 2 TensorCores/chip: CORE_PARALLEL actually splits the grid axis
    # across cores (plain "parallel" barely changes codegen).  Only use it when
    # the axis splits evenly; v5e/v6e (1 TC) always take the "parallel" path.
    if _NUM_TC >= 2 and grid_b >= _NUM_TC and grid_b % _NUM_TC == 0:
        try:
            return (pltpu.CORE_PARALLEL,)
        except AttributeError:
            pass
    return ("parallel",)


def _pick_batch_tile(B, OH, OW, Cin, Cout):
    """Largest divisor of B that fills the MXU M dim (TB*OH*OW >= ~256) while the
    double-buffered in/out blocks stay well inside the VMEM budget."""
    in_bytes = (OH + 1) * 2 * (OW + 1) * 2 * Cin * 2      # bf16 folded input
    out_bytes = (OH + 2) * (OW + 2) * Cout * 2            # bf16 padded output
    per_img = in_bytes + out_bytes
    cap = max(1, _VMEM_LIMIT // (4 * max(per_img, 1)))    # 2x double-buffer + slack
    target = -(-256 // max(OH * OW, 1))
    best = 1
    for d in range(1, B + 1):
        if B % d:
            continue
        if d > cap:
            break
        best = d
        if d >= target:
            break
    return best


# ---------------------------------------------------------------------------
# Conv2dBlock kernel: fused 3x3 / stride-2 / pad-1 conv + bias + LeakyReLU.
#
# Input block:  x_ref (TB, OH+1, 2, OW+1, 2*Cin) bf16   (halo-padded, width and
#   height stride-2 pairs folded so every tap is a contiguous slice).
# Weights:  w1_ref (3, 2*Cin, Cout) taps (ki, kj in {0,1});
#           w2_ref (3,   Cin, Cout) taps (ki, kj=2);   b_ref (1, Cout) f32.
# Output block: (TB, OH+2, OW+2, Cout) bf16 already halo-padded for the next
#   layer (zero border written in-kernel), or (TB, OH, OW, Cout) for the last
#   layer.  Six MXU dots of shape (TB*OH*OW, 2C|C) x (2C|C, Cout) per step.
# ---------------------------------------------------------------------------
def _conv_block_kernel(x_ref, w1_ref, w2_ref, b_ref, o_ref, *,
                       TB, OH, OW, C, Cout, pad_out):
    M = TB * OH * OW
    x = x_ref[...]                                       # (TB, OH+1, 2, OW+1, 2C)
    acc = jnp.broadcast_to(b_ref[...].astype(jnp.float32), (M, Cout))
    for ki in range(3):                                  # 3 kernel rows -> 6 dots
        if ki < 2:
            r = x[:, :OH, ki, :, :]                      # input rows 2*oh + ki
        else:
            r = x[:, 1:OH + 1, 0, :, :]                  # input rows 2*oh + 2
        a = r[:, :, :OW, :].reshape(M, 2 * C)            # taps kj in {0,1}
        c2 = r[:, :, 1:OW + 1, :C].reshape(M, C)         # tap  kj = 2
        acc = acc + jnp.dot(a, w1_ref[ki], preferred_element_type=jnp.float32)
        acc = acc + jnp.dot(c2, w2_ref[ki], preferred_element_type=jnp.float32)
    acc = jnp.where(acc >= 0.0, acc, _LEAKY_SLOPE * acc)  # LeakyReLU in f32
    y = acc.reshape(TB, OH, OW, Cout).astype(o_ref.dtype)
    if pad_out:
        # Write the next layer's zero halo in-kernel: no jnp.pad HBM pass.
        o_ref[...] = jnp.zeros_like(o_ref)
        o_ref[:, 1:OH + 1, 1:OW + 1, :] = y
    else:
        o_ref[...] = y


def conv_block(xp, w1, w2, bias, *, pad_out):
    """One Conv2dBlock (3x3/s2/p1 + bias + LeakyReLU).

    xp: (B, H+2, W+2, Cin) bf16 NHWC activation, already zero-halo-padded.
    Returns bf16 NHWC output, halo-padded for the next layer iff pad_out.
    """
    B, Hp, Wp, C = xp.shape
    H, W = Hp - 2, Wp - 2
    assert H % 2 == 0 and W % 2 == 0, (
        "stride-2 conv path assumes even spatial dims at every layer "
        "(out_size must be divisible by 2**num_blocks)")
    OH, OW = H // 2, W // 2
    Cout = w1.shape[-1]
    # Free row-major reshape: fold the stride-2 row/column pairs so the 3x3
    # taps become contiguous slices of the VMEM block inside the kernel.
    xr = xp.reshape(B, OH + 1, 2, OW + 1, 2 * C)
    TB = _pick_batch_tile(B, OH, OW, C, Cout)
    grid = (B // TB,)
    out_shape = (B, OH + 2, OW + 2, Cout) if pad_out else (B, OH, OW, Cout)
    kernel = functools.partial(_conv_block_kernel, TB=TB, OH=OH, OW=OW, C=C,
                               Cout=Cout, pad_out=pad_out)
    return pl.pallas_call(
        kernel,
        out_shape=jax.ShapeDtypeStruct(out_shape, jnp.bfloat16),
        grid=grid,
        in_specs=[
            pl.BlockSpec((TB, OH + 1, 2, OW + 1, 2 * C),
                         lambda b: (b, 0, 0, 0, 0)),
            pl.BlockSpec((3, 2 * C, Cout), lambda b: (0, 0, 0)),   # resident
            pl.BlockSpec((3, C, Cout), lambda b: (0, 0, 0)),       # resident
            pl.BlockSpec((1, Cout), lambda b: (0, 0)),             # resident
        ],
        out_specs=pl.BlockSpec((TB,) + out_shape[1:], lambda b: (b, 0, 0, 0)),
        compiler_params=pltpu.CompilerParams(
            dimension_semantics=_dim_semantics(grid[0]),
            vmem_limit_bytes=_VMEM_LIMIT),
    )(xr, w1, w2, bias)


# ---------------------------------------------------------------------------
# Fused linear head:  sigmoid(W2 @ leaky_relu(W1 @ feat + b1_eff) + b2)
# The label contribution (batch-uniform) is pre-folded into b1_eff outside the
# kernel; h1 never touches HBM; exact sigmoid (cheap at N=1).
# ---------------------------------------------------------------------------
def _head2_kernel(h_ref, w1_ref, b1_ref, w2_ref, b2_ref, o_ref):
    h1 = jnp.dot(h_ref[...], w1_ref[...], preferred_element_type=jnp.float32)
    h1 = h1 + b1_ref[...]
    h1 = jnp.where(h1 >= 0.0, h1, _LEAKY_SLOPE * h1)
    z = jnp.dot(h1.astype(jnp.bfloat16), w2_ref[...],
                preferred_element_type=jnp.float32) + b2_ref[...]
    z0 = z[:, :1]
    o_ref[...] = (1.0 / (1.0 + jnp.exp(-z0))).astype(o_ref.dtype)


def _head1_kernel(h_ref, w_ref, b_ref, o_ref):
    z = jnp.dot(h_ref[...], w_ref[...],
                preferred_element_type=jnp.float32) + b_ref[...]
    z0 = z[:, :1]
    o_ref[...] = (1.0 / (1.0 + jnp.exp(-z0))).astype(o_ref.dtype)


def _head2(feat, w1, b1, w2, b2):
    B, K = feat.shape
    N1, N2 = w1.shape[1], w2.shape[1]
    TB = min(B, 512)
    grid = (pl.cdiv(B, TB),)
    return pl.pallas_call(
        _head2_kernel,
        out_shape=jax.ShapeDtypeStruct((B, 1), jnp.float32),
        grid=grid,
        in_specs=[
            pl.BlockSpec((TB, K), lambda i: (i, 0)),
            pl.BlockSpec((K, N1), lambda i: (0, 0)),
            pl.BlockSpec((1, N1), lambda i: (0, 0)),
            pl.BlockSpec((N1, N2), lambda i: (0, 0)),
            pl.BlockSpec((1, N2), lambda i: (0, 0)),
        ],
        out_specs=pl.BlockSpec((TB, 1), lambda i: (i, 0)),
        compiler_params=pltpu.CompilerParams(
            dimension_semantics=_dim_semantics(grid[0]),
            vmem_limit_bytes=_VMEM_LIMIT),
    )(feat, w1, b1, w2, b2)


def _head1(feat, w, b):
    B, K = feat.shape
    N = w.shape[1]
    TB = min(B, 512)
    grid = (pl.cdiv(B, TB),)
    return pl.pallas_call(
        _head1_kernel,
        out_shape=jax.ShapeDtypeStruct((B, 1), jnp.float32),
        grid=grid,
        in_specs=[
            pl.BlockSpec((TB, K), lambda i: (i, 0)),
            pl.BlockSpec((K, N), lambda i: (0, 0)),
            pl.BlockSpec((1, N), lambda i: (0, 0)),
        ],
        out_specs=pl.BlockSpec((TB, 1), lambda i: (i, 0)),
        compiler_params=pltpu.CompilerParams(
            dimension_semantics=_dim_semantics(grid[0]),
            vmem_limit_bytes=_VMEM_LIMIT),
    )(feat, w, b)


# ---------------------------------------------------------------------------
# Weight packing helpers (all one-time, init-side).
# ---------------------------------------------------------------------------
def _pack_conv_weights(w_oihw, bias):
    cout = w_oihw.shape[0]
    wh = jnp.transpose(w_oihw, (2, 3, 1, 0))                        # (3,3,Cin,Cout)
    w1 = jnp.concatenate([wh[:, 0, :, :], wh[:, 1, :, :]], axis=1)  # (3,2Cin,Cout)
    w2 = wh[:, 2, :, :]                                             # (3, Cin,Cout)
    return (w1.astype(jnp.bfloat16), w2.astype(jnp.bfloat16),
            bias.reshape(1, cout).astype(jnp.float32))


# ---------------------------------------------------------------------------
# Discriminator (forward semantics of the PyTorch module)
# ---------------------------------------------------------------------------
class DiscriminatorPallas:
    def __init__(self, out_channels, out_size, min_channels, max_channels,
                 num_classes, lin_layer_size=128, key=None):
        channel_numbers = [out_channels] + [
            int(c) for c in 2 ** np.arange(np.log2(min_channels),
                                           np.log2(max_channels) + 1).astype(int)]
        self.channel_numbers = channel_numbers
        n_blocks = len(channel_numbers) - 1
        assert out_size % (2 ** n_blocks) == 0, (
            "out_size must be divisible by 2**num_conv_blocks")
        linear_nodes = int((out_size / 2) ** 2 * min_channels *
                           (1 / 2) ** (n_blocks - 1))

        keys = jax.random.split(key, 2 * n_blocks + 4)
        ki = 0
        self.conv_params_ref = []      # OIHW f32 (reference path)
        self.conv_params_pallas = []   # packed bf16 tap matrices (kernel path)
        for i in range(n_blocks):
            in_ch, out_ch = channel_numbers[i], channel_numbers[i + 1]
            w = jax.random.normal(keys[ki], (out_ch, in_ch, 3, 3), jnp.float32) * 0.1
            ki += 1
            b = jax.random.normal(keys[ki], (out_ch,), jnp.float32) * 0.1
            ki += 1
            self.conv_params_ref.append((w, b))
            self.conv_params_pallas.append(_pack_conv_weights(w, b))

        s_last = out_size // (2 ** n_blocks)
        c_last = channel_numbers[-1]
        feat_dim = s_last * s_last * c_last
        assert feat_dim == linear_nodes
        self.feat_dim = feat_dim
        # NHWC-flatten position -> NCHW-flatten position (one-time permutation,
        # lets the conv tower stay NHWC end-to-end with no extra transposes).
        perm = (np.arange(c_last)[None, None, :] * (s_last * s_last)
                + np.arange(s_last)[:, None, None] * s_last
                + np.arange(s_last)[None, :, None]).reshape(-1)

        in_dim = feat_dim + num_classes
        self.lin_params_ref = []
        if lin_layer_size > 0:
            w1 = jax.random.normal(keys[ki], (in_dim, lin_layer_size), jnp.float32) * 0.05
            ki += 1
            b1 = jax.random.normal(keys[ki], (lin_layer_size,), jnp.float32) * 0.05
            ki += 1
            w2 = jax.random.normal(keys[ki], (lin_layer_size, 1), jnp.float32) * 0.05
            ki += 1
            b2 = jax.random.normal(keys[ki], (1,), jnp.float32) * 0.05
            ki += 1
            self.lin_params_ref = [(w1, b1, "leaky_relu"), (w2, b2, "sigmoid")]
            self.head_kind = "two"
            self.hw1_feat = w1[:feat_dim][perm].astype(jnp.bfloat16)   # NHWC rows
            self.hw1_lab = w1[feat_dim:]                               # (ncls, N1) f32
            self.hb1 = b1.reshape(1, -1).astype(jnp.float32)
            self.hw2 = jnp.pad(w2, ((0, 0), (0, 127))).astype(jnp.bfloat16)  # N=1->128
            self.hb2 = jnp.pad(b2.reshape(1, 1), ((0, 0), (0, 127))).astype(jnp.float32)
        else:
            w = jax.random.normal(keys[ki], (in_dim, 1), jnp.float32) * 0.05
            ki += 1
            bf = jax.random.normal(keys[ki], (1,), jnp.float32) * 0.05
            ki += 1
            self.lin_params_ref = [(w, bf, "sigmoid")]
            self.head_kind = "one"
            self.hw_feat = jnp.pad(w[:feat_dim][perm],
                                   ((0, 0), (0, 127))).astype(jnp.bfloat16)
            self.hw_lab = w[feat_dim:]            # (ncls, 1) f32
            self.hb = bf                          # (1,) f32

    def __call__(self, x, style_labels):
        # x: (B, C, H, W) NCHW like the PyTorch module; one transpose + one pad
        # at entry, then bf16 NHWC end-to-end (each conv writes the next
        # layer's halo in-kernel, so no further pads/casts between layers).
        B = x.shape[0]
        h = jnp.transpose(x, (0, 2, 3, 1)).astype(jnp.bfloat16)
        hp = jnp.pad(h, ((0, 0), (1, 1), (1, 1), (0, 0)))
        n = len(self.conv_params_pallas)
        for i, (w1, w2, b) in enumerate(self.conv_params_pallas):
            hp = conv_block(hp, w1, w2, b, pad_out=(i < n - 1))
        feat = hp.reshape(B, -1)                  # free NHWC flatten (bf16)
        lab = style_labels.astype(jnp.float32)
        if self.head_kind == "two":
            # labels are batch-uniform -> fold their contribution into the bias
            b1_eff = self.hb1 + (lab @ self.hw1_lab)[None, :]
            return _head2(feat, self.hw1_feat, b1_eff, self.hw2, self.hb2)
        b_eff = jnp.pad((self.hb + lab @ self.hw_lab).reshape(1, 1),
                        ((0, 0), (0, 127)))
        return _head1(feat, self.hw_feat, b_eff)


# ---------------------------------------------------------------------------
# Pure-JAX f32 reference (standard conv + NCHW flatten, as in the PyTorch code)
# ---------------------------------------------------------------------------
def reference_forward(model, x, style_labels):
    h = x
    for (w, b) in model.conv_params_ref:
        h = lax.conv_general_dilated(
            h, w, window_strides=(2, 2), padding=((1, 1), (1, 1)),
            dimension_numbers=("NCHW", "OIHW", "NCHW"),
            precision=lax.Precision.HIGHEST)
        h = h + b[None, :, None, None]
        h = jnp.where(h >= 0.0, h, _LEAKY_SLOPE * h)
    B = h.shape[0]
    feat = h.reshape(B, -1)                       # nn.Flatten() on NCHW
    labels = style_labels[None, :] * jnp.ones((B, 1), jnp.float32)
    z = jnp.concatenate([feat, labels], axis=1)
    for (w, b, act) in model.lin_params_ref:
        z = jnp.dot(z, w, precision=lax.Precision.HIGHEST) + b[None, :]
        if act == "leaky_relu":
            z = jnp.where(z >= 0.0, z, _LEAKY_SLOPE * z)
        else:
            z = jax.nn.sigmoid(z)
    return z


if __name__ == "__main__":
    key = jax.random.PRNGKey(0)
    k_param, k_x, k_lab = jax.random.split(key, 3)

    out_channels, out_size = 4, 16
    min_channels, max_channels = 8, 16
    num_classes = 3

    model = DiscriminatorPallas(out_channels, out_size, min_channels,
                                max_channels, num_classes,
                                lin_layer_size=128, key=k_param)

    x = jax.random.normal(k_x, (2, out_channels, out_size, out_size), jnp.float32)
    style_labels = jax.random.uniform(k_lab, (num_classes,), jnp.float32)

    fwd = jax.jit(model.__call__)
    out = jax.block_until_ready(fwd(x, style_labels))
    assert out.shape == (2, 1), out.shape

    ref = jax.block_until_ready(reference_forward(model, x, style_labels))
    np.testing.assert_allclose(np.asarray(out), np.asarray(ref),
                               atol=2e-2, rtol=2e-2)
    print("KERNEL_OK")
</pallas_src>

<mosaic_0001>
module attributes {stable_mosaic.version = 11 : i64} {
  func.func @_conv_block_kernel(%arg0: i32, %arg1: memref<2x9x2x9x8xbf16, #tpu.memory_space<vmem>>, %arg2: memref<3x8x8xbf16, #tpu.memory_space<vmem>>, %arg3: memref<3x4x8xbf16, #tpu.memory_space<vmem>>, %arg4: memref<1x8xf32, #tpu.memory_space<vmem>>, %arg5: memref<2x10x10x8xbf16, #tpu.memory_space<vmem>>) attributes {dimension_semantics = [#tpu.dimension_semantics<parallel>], iteration_bounds = array<i64: 1>, scalar_prefetch = 0 : i64, scratch_operands = 0 : i64, tpu.core_type = #tpu.core_type<tc>, window_params = [{transform_indices = @transform_0, window_bounds = array<i64: 2, 9, 2, 9, 8>}, {pipeline_mode = #tpu.pipeline_mode<synchronous>, transform_indices = @transform_1, window_bounds = array<i64: 3, 8, 8>}, {pipeline_mode = #tpu.pipeline_mode<synchronous>, transform_indices = @transform_2, window_bounds = array<i64: 3, 4, 8>}, {pipeline_mode = #tpu.pipeline_mode<synchronous>, transform_indices = @transform_3, window_bounds = array<i64: 1, 8>}, {transform_indices = @transform_4, window_bounds = array<i64: 2, 10, 10, 8>}]} {
    %c0 = arith.constant 0 : index
    %c0_0 = arith.constant 0 : index
    %c0_1 = arith.constant 0 : index
    %c0_2 = arith.constant 0 : index
    %c0_3 = arith.constant 0 : index
    %0 = vector.load %arg1[%c0, %c0_0, %c0_1, %c0_2, %c0_3] : memref<2x9x2x9x8xbf16, #tpu.memory_space<vmem>>, vector<2x9x2x9x8xbf16>
    %c0_4 = arith.constant 0 : index
    %c0_5 = arith.constant 0 : index
    %1 = vector.load %arg4[%c0_4, %c0_5] : memref<1x8xf32, #tpu.memory_space<vmem>>, vector<1x8xf32>
    %2 = vector.shape_cast %1 : vector<1x8xf32> to vector<1x8xf32>
    %3 = vector.broadcast %2 : vector<1x8xf32> to vector<128x8xf32>
    %4 = vector.extract_strided_slice %0 {offsets = [0, 0, 0, 0, 0], sizes = [2, 8, 1, 9, 8], strides = [1, 1, 1, 1, 1]} : vector<2x9x2x9x8xbf16> to vector<2x8x1x9x8xbf16>
    %5 = vector.shape_cast %4 : vector<2x8x1x9x8xbf16> to vector<2x8x9x8xbf16>
    %6 = vector.extract_strided_slice %5 {offsets = [0, 0, 0, 0], sizes = [2, 8, 8, 8], strides = [1, 1, 1, 1]} : vector<2x8x9x8xbf16> to vector<2x8x8x8xbf16>
    %7 = vector.shape_cast %6 : vector<2x8x8x8xbf16> to vector<128x8xbf16>
    %8 = vector.extract_strided_slice %5 {offsets = [0, 0, 1, 0], sizes = [2, 8, 8, 4], strides = [1, 1, 1, 1]} : vector<2x8x9x8xbf16> to vector<2x8x8x4xbf16>
    %9 = vector.shape_cast %8 : vector<2x8x8x4xbf16> to vector<128x4xbf16>
    %c0_6 = arith.constant 0 : index
    %c0_7 = arith.constant 0 : index
    %c0_8 = arith.constant 0 : index
    %10 = vector.load %arg2[%c0_6, %c0_7, %c0_8] : memref<3x8x8xbf16, #tpu.memory_space<vmem>>, vector<1x8x8xbf16>
    %11 = vector.shape_cast %10 : vector<1x8x8xbf16> to vector<8x8xbf16>
    %cst = arith.constant dense<0.000000e+00> : vector<128x8xf32>
    %12 = tpu.matmul %7, %11, %cst {dimension_numbers = #tpu.dot_dimension_numbers<[1], [0], [0], [1], [0, 0, 1, 1], [], []>} : vector<128x8xbf16>, vector<8x8xbf16>, vector<128x8xf32> -> vector<128x8xf32>
    %13 = arith.addf %3, %12 : vector<128x8xf32>
    %c0_9 = arith.constant 0 : index
    %c0_10 = arith.constant 0 : index
    %c0_11 = arith.constant 0 : index
    %14 = vector.load %arg3[%c0_9, %c0_10, %c0_11] : memref<3x4x8xbf16, #tpu.memory_space<vmem>>, vector<1x4x8xbf16>
    %15 = vector.shape_cast %14 : vector<1x4x8xbf16> to vector<4x8xbf16>
    %cst_12 = arith.constant dense<0.000000e+00> : vector<128x8xf32>
    %16 = tpu.matmul %9, %15, %cst_12 {dimension_numbers = #tpu.dot_dimension_numbers<[1], [0], [0], [1], [0, 0, 1, 1], [], []>} : vector<128x4xbf16>, vector<4x8xbf16>, vector<128x8xf32> -> vector<128x8xf32>
    %17 = arith.addf %13, %16 : vector<128x8xf32>
    %18 = vector.extract_strided_slice %0 {offsets = [0, 0, 1, 0, 0], sizes = [2, 8, 1, 9, 8], strides = [1, 1, 1, 1, 1]} : vector<2x9x2x9x8xbf16> to vector<2x8x1x9x8xbf16>
    %19 = vector.shape_cast %18 : vector<2x8x1x9x8xbf16> to vector<2x8x9x8xbf16>
    %20 = vector.extract_strided_slice %19 {offsets = [0, 0, 0, 0], sizes = [2, 8, 8, 8], strides = [1, 1, 1, 1]} : vector<2x8x9x8xbf16> to vector<2x8x8x8xbf16>
    %21 = vector.shape_cast %20 : vector<2x8x8x8xbf16> to vector<128x8xbf16>
    %22 = vector.extract_strided_slice %19 {offsets = [0, 0, 1, 0], sizes = [2, 8, 8, 4], strides = [1, 1, 1, 1]} : vector<2x8x9x8xbf16> to vector<2x8x8x4xbf16>
    %23 = vector.shape_cast %22 : vector<2x8x8x4xbf16> to vector<128x4xbf16>
    %c1 = arith.constant 1 : index
    %c0_13 = arith.constant 0 : index
    %c0_14 = arith.constant 0 : index
    %24 = vector.load %arg2[%c1, %c0_13, %c0_14] : memref<3x8x8xbf16, #tpu.memory_space<vmem>>, vector<1x8x8xbf16>
    %25 = vector.shape_cast %24 : vector<1x8x8xbf16> to vector<8x8xbf16>
    %cst_15 = arith.constant dense<0.000000e+00> : vector<128x8xf32>
    %26 = tpu.matmul %21, %25, %cst_15 {dimension_numbers = #tpu.dot_dimension_numbers<[1], [0], [0], [1], [0, 0, 1, 1], [], []>} : vector<128x8xbf16>, vector<8x8xbf16>, vector<128x8xf32> -> vector<128x8xf32>
    %27 = arith.addf %17, %26 : vector<128x8xf32>
    %c1_16 = arith.constant 1 : index
    %c0_17 = arith.constant 0 : index
    %c0_18 = arith.constant 0 : index
    %28 = vector.load %arg3[%c1_16, %c0_17, %c0_18] : memref<3x4x8xbf16, #tpu.memory_space<vmem>>, vector<1x4x8xbf16>
    %29 = vector.shape_cast %28 : vector<1x4x8xbf16> to vector<4x8xbf16>
    %cst_19 = arith.constant dense<0.000000e+00> : vector<128x8xf32>
    %30 = tpu.matmul %23, %29, %cst_19 {dimension_numbers = #tpu.dot_dimension_numbers<[1], [0], [0], [1], [0, 0, 1, 1], [], []>} : vector<128x4xbf16>, vector<4x8xbf16>, vector<128x8xf32> -> vector<128x8xf32>
    %31 = arith.addf %27, %30 : vector<128x8xf32>
    %32 = vector.extract_strided_slice %0 {offsets = [0, 1, 0, 0, 0], sizes = [2, 8, 1, 9, 8], strides = [1, 1, 1, 1, 1]} : vector<2x9x2x9x8xbf16> to vector<2x8x1x9x8xbf16>
    %33 = vector.shape_cast %32 : vector<2x8x1x9x8xbf16> to vector<2x8x9x8xbf16>
    %34 = vector.extract_strided_slice %33 {offsets = [0, 0, 0, 0], sizes = [2, 8, 8, 8], strides = [1, 1, 1, 1]} : vector<2x8x9x8xbf16> to vector<2x8x8x8xbf16>
    %35 = vector.shape_cast %34 : vector<2x8x8x8xbf16> to vector<128x8xbf16>
    %36 = vector.extract_strided_slice %33 {offsets = [0, 0, 1, 0], sizes = [2, 8, 8, 4], strides = [1, 1, 1, 1]} : vector<2x8x9x8xbf16> to vector<2x8x8x4xbf16>
    %37 = vector.shape_cast %36 : vector<2x8x8x4xbf16> to vector<128x4xbf16>
    %c2 = arith.constant 2 : index
    %c0_20 = arith.constant 0 : index
    %c0_21 = arith.constant 0 : index
    %38 = vector.load %arg2[%c2, %c0_20, %c0_21] : memref<3x8x8xbf16, #tpu.memory_space<vmem>>, vector<1x8x8xbf16>
    %39 = vector.shape_cast %38 : vector<1x8x8xbf16> to vector<8x8xbf16>
    %cst_22 = arith.constant dense<0.000000e+00> : vector<128x8xf32>
    %40 = tpu.matmul %35, %39, %cst_22 {dimension_numbers = #tpu.dot_dimension_numbers<[1], [0], [0], [1], [0, 0, 1, 1], [], []>} : vector<128x8xbf16>, vector<8x8xbf16>, vector<128x8xf32> -> vector<128x8xf32>
    %41 = arith.addf %31, %40 : vector<128x8xf32>
    %c2_23 = arith.constant 2 : index
    %c0_24 = arith.constant 0 : index
    %c0_25 = arith.constant 0 : index
    %42 = vector.load %arg3[%c2_23, %c0_24, %c0_25] : memref<3x4x8xbf16, #tpu.memory_space<vmem>>, vector<1x4x8xbf16>
    %43 = vector.shape_cast %42 : vector<1x4x8xbf16> to vector<4x8xbf16>
    %cst_26 = arith.constant dense<0.000000e+00> : vector<128x8xf32>
    %44 = tpu.matmul %37, %43, %cst_26 {dimension_numbers = #tpu.dot_dimension_numbers<[1], [0], [0], [1], [0, 0, 1, 1], [], []>} : vector<128x4xbf16>, vector<4x8xbf16>, vector<128x8xf32> -> vector<128x8xf32>
    %45 = arith.addf %41, %44 : vector<128x8xf32>
    %cst_27 = arith.constant 0.000000e+00 : f32
    %46 = vector.broadcast %cst_27 : f32 to vector<128x8xf32>
    %47 = arith.cmpf oge, %45, %46 : vector<128x8xf32>
    %cst_28 = arith.constant 0.00999999977 : f32
    %48 = vector.broadcast %cst_28 : f32 to vector<128x8xf32>
    %49 = arith.mulf %48, %45 : vector<128x8xf32>
    %50 = arith.select %47, %45, %49 : vector<128x8xi1>, vector<128x8xf32>
    %51 = vector.shape_cast %50 : vector<128x8xf32> to vector<2x8x8x8xf32>
    %52 = arith.truncf %51 : vector<2x8x8x8xf32> to vector<2x8x8x8xbf16>
    %cst_29 = arith.constant 0.000000e+00 : bf16
    %53 = vector.broadcast %cst_29 : bf16 to vector<2x10x10x8xbf16>
    %c0_30 = arith.constant 0 : index
    %c0_31 = arith.constant 0 : index
    %c0_32 = arith.constant 0 : index
    %c0_33 = arith.constant 0 : index
    %54 = vector.load %arg5[%c0_30, %c0_31, %c0_32, %c0_33] : memref<2x10x10x8xbf16, #tpu.memory_space<vmem>>, vector<2x10x10x8xbf16>
    tpu.vector_store %arg5[%c0_30, %c0_31, %c0_32, %c0_33], %53 {strides = array<i32>} : memref<2x10x10x8xbf16, #tpu.memory_space<vmem>>, vector<2x10x10x8xbf16>,
    %c0_34 = arith.constant 0 : index
    %c1_35 = arith.constant 1 : index
    %c1_36 = arith.constant 1 : index
    %c0_37 = arith.constant 0 : index
    %55 = vector.load %arg5[%c0_34, %c1_35, %c1_36, %c0_37] : memref<2x10x10x8xbf16, #tpu.memory_space<vmem>>, vector<2x8x8x8xbf16>
    tpu.vector_store %arg5[%c0_34, %c1_35, %c1_36, %c0_37], %52 {strides = array<i32>} : memref<2x10x10x8xbf16, #tpu.memory_space<vmem>>, vector<2x8x8x8xbf16>,
    return
  }
  func.func @transform_0(%arg0: i32) -> (i32, i32, i32, i32, i32) {
    %c0_i32 = arith.constant 0 : i32
    %c0_i32_0 = arith.constant 0 : i32
    %c0_i32_1 = arith.constant 0 : i32
    %c0_i32_2 = arith.constant 0 : i32
    %c0_i32_3 = arith.constant 0 : i32
    return %arg0, %c0_i32, %c0_i32_0, %c0_i32_1, %c0_i32_2 : i32, i32, i32, i32, i32
  }
  func.func @transform_1(%arg0: i32) -> (i32, i32, i32) {
    %c0_i32 = arith.constant 0 : i32
    %c0_i32_0 = arith.constant 0 : i32
    %c0_i32_1 = arith.constant 0 : i32
    %c0_i32_2 = arith.constant 0 : i32
    return %c0_i32, %c0_i32_0, %c0_i32_1 : i32, i32, i32
  }
  func.func @transform_2(%arg0: i32) -> (i32, i32, i32) {
    %c0_i32 = arith.constant 0 : i32
    %c0_i32_0 = arith.constant 0 : i32
    %c0_i32_1 = arith.constant 0 : i32
    %c0_i32_2 = arith.constant 0 : i32
    return %c0_i32, %c0_i32_0, %c0_i32_1 : i32, i32, i32
  }
  func.func @transform_3(%arg0: i32) -> (i32, i32) {
    %c0_i32 = arith.constant 0 : i32
    %c0_i32_0 = arith.constant 0 : i32
    %c0_i32_1 = arith.constant 0 : i32
    return %c0_i32, %c0_i32_0 : i32, i32
  }
  func.func @transform_4(%arg0: i32) -> (i32, i32, i32, i32) {
    %c0_i32 = arith.constant 0 : i32
    %c0_i32_0 = arith.constant 0 : i32
    %c0_i32_1 = arith.constant 0 : i32
    %c0_i32_2 = arith.constant 0 : i32
    return %arg0, %c0_i32, %c0_i32_0, %c0_i32_1 : i32, i32, i32, i32
  }
}

module attributes {stable_mosaic.version = 11 : i64} {
  func.func @_conv_block_kernel(%arg0: i32, %arg1: memref<2x5x2x5x16xbf16, #tpu.memory_space<vmem>>, %arg2: memref<3x16x16xbf16, #tpu.memory_space<vmem>>, %arg3: memref<3x8x16xbf16, #tpu.memory_space<vmem>>, %arg4: memref<1x16xf32, #tpu.memory_space<vmem>>, %arg5: memref<2x4x4x16xbf16, #tpu.memory_space<vmem>>) attributes {dimension_semantics = [#tpu.dimension_semantics<parallel>], iteration_bounds = array<i64: 1>, scalar_prefetch = 0 : i64, scratch_operands = 0 : i64, tpu.core_type = #tpu.core_type<tc>, window_params = [{transform_indices = @transform_0, window_bounds = array<i64: 2, 5, 2, 5, 16>}, {pipeline_mode = #tpu.pipeline_mode<synchronous>, transform_indices = @transform_1, window_bounds = array<i64: 3, 16, 16>}, {pipeline_mode = #tpu.pipeline_mode<synchronous>, transform_indices = @transform_2, window_bounds = array<i64: 3, 8, 16>}, {pipeline_mode = #tpu.pipeline_mode<synchronous>, transform_indices = @transform_3, window_bounds = array<i64: 1, 16>}, {transform_indices = @transform_4, window_bounds = array<i64: 2, 4, 4, 16>}]} {
    %c0 = arith.constant 0 : index
    %c0_0 = arith.constant 0 : index
    %c0_1 = arith.constant 0 : index
    %c0_2 = arith.constant 0 : index
    %c0_3 = arith.constant 0 : index
    %0 = vector.load %arg1[%c0, %c0_0, %c0_1, %c0_2, %c0_3] : memref<2x5x2x5x16xbf16, #tpu.memory_space<vmem>>, vector<2x5x2x5x16xbf16>
    %c0_4 = arith.constant 0 : index
    %c0_5 = arith.constant 0 : index
    %1 = vector.load %arg4[%c0_4, %c0_5] : memref<1x16xf32, #tpu.memory_space<vmem>>, vector<1x16xf32>
    %2 = vector.shape_cast %1 : vector<1x16xf32> to vector<1x16xf32>
    %3 = vector.broadcast %2 : vector<1x16xf32> to vector<32x16xf32>
    %4 = vector.extract_strided_slice %0 {offsets = [0, 0, 0, 0, 0], sizes = [2, 4, 1, 5, 16], strides = [1, 1, 1, 1, 1]} : vector<2x5x2x5x16xbf16> to vector<2x4x1x5x16xbf16>
    %5 = vector.shape_cast %4 : vector<2x4x1x5x16xbf16> to vector<2x4x5x16xbf16>
    %6 = vector.extract_strided_slice %5 {offsets = [0, 0, 0, 0], sizes = [2, 4, 4, 16], strides = [1, 1, 1, 1]} : vector<2x4x5x16xbf16> to vector<2x4x4x16xbf16>
    %7 = vector.shape_cast %6 : vector<2x4x4x16xbf16> to vector<32x16xbf16>
    %8 = vector.extract_strided_slice %5 {offsets = [0, 0, 1, 0], sizes = [2, 4, 4, 8], strides = [1, 1, 1, 1]} : vector<2x4x5x16xbf16> to vector<2x4x4x8xbf16>
    %9 = vector.shape_cast %8 : vector<2x4x4x8xbf16> to vector<32x8xbf16>
    %c0_6 = arith.constant 0 : index
    %c0_7 = arith.constant 0 : index
    %c0_8 = arith.constant 0 : index
    %10 = vector.load %arg2[%c0_6, %c0_7, %c0_8] : memref<3x16x16xbf16, #tpu.memory_space<vmem>>, vector<1x16x16xbf16>
    %11 = vector.shape_cast %10 : vector<1x16x16xbf16> to vector<16x16xbf16>
    %cst = arith.constant dense<0.000000e+00> : vector<32x16xf32>
    %12 = tpu.matmul %7, %11, %cst {dimension_numbers = #tpu.dot_dimension_numbers<[1], [0], [0], [1], [0, 0, 1, 1], [], []>} : vector<32x16xbf16>, vector<16x16xbf16>, vector<32x16xf32> -> vector<32x16xf32>
    %13 = arith.addf %3, %12 : vector<32x16xf32>
    %c0_9 = arith.constant 0 : index
    %c0_10 = arith.constant 0 : index
    %c0_11 = arith.constant 0 : index
    %14 = vector.load %arg3[%c0_9, %c0_10, %c0_11] : memref<3x8x16xbf16, #tpu.memory_space<vmem>>, vector<1x8x16xbf16>
    %15 = vector.shape_cast %14 : vector<1x8x16xbf16> to vector<8x16xbf16>
    %cst_12 = arith.constant dense<0.000000e+00> : vector<32x16xf32>
    %16 = tpu.matmul %9, %15, %cst_12 {dimension_numbers = #tpu.dot_dimension_numbers<[1], [0], [0], [1], [0, 0, 1, 1], [], []>} : vector<32x8xbf16>, vector<8x16xbf16>, vector<32x16xf32> -> vector<32x16xf32>
    %17 = arith.addf %13, %16 : vector<32x16xf32>
    %18 = vector.extract_strided_slice %0 {offsets = [0, 0, 1, 0, 0], sizes = [2, 4, 1, 5, 16], strides = [1, 1, 1, 1, 1]} : vector<2x5x2x5x16xbf16> to vector<2x4x1x5x16xbf16>
    %19 = vector.shape_cast %18 : vector<2x4x1x5x16xbf16> to vector<2x4x5x16xbf16>
    %20 = vector.extract_strided_slice %19 {offsets = [0, 0, 0, 0], sizes = [2, 4, 4, 16], strides = [1, 1, 1, 1]} : vector<2x4x5x16xbf16> to vector<2x4x4x16xbf16>
    %21 = vector.shape_cast %20 : vector<2x4x4x16xbf16> to vector<32x16xbf16>
    %22 = vector.extract_strided_slice %19 {offsets = [0, 0, 1, 0], sizes = [2, 4, 4, 8], strides = [1, 1, 1, 1]} : vector<2x4x5x16xbf16> to vector<2x4x4x8xbf16>
    %23 = vector.shape_cast %22 : vector<2x4x4x8xbf16> to vector<32x8xbf16>
    %c1 = arith.constant 1 : index
    %c0_13 = arith.constant 0 : index
    %c0_14 = arith.constant 0 : index
    %24 = vector.load %arg2[%c1, %c0_13, %c0_14] : memref<3x16x16xbf16, #tpu.memory_space<vmem>>, vector<1x16x16xbf16>
    %25 = vector.shape_cast %24 : vector<1x16x16xbf16> to vector<16x16xbf16>
    %cst_15 = arith.constant dense<0.000000e+00> : vector<32x16xf32>
    %26 = tpu.matmul %21, %25, %cst_15 {dimension_numbers = #tpu.dot_dimension_numbers<[1], [0], [0], [1], [0, 0, 1, 1], [], []>} : vector<32x16xbf16>, vector<16x16xbf16>, vector<32x16xf32> -> vector<32x16xf32>
    %27 = arith.addf %17, %26 : vector<32x16xf32>
    %c1_16 = arith.constant 1 : index
    %c0_17 = arith.constant 0 : index
    %c0_18 = arith.constant 0 : index
    %28 = vector.load %arg3[%c1_16, %c0_17, %c0_18] : memref<3x8x16xbf16, #tpu.memory_space<vmem>>, vector<1x8x16xbf16>
    %29 = vector.shape_cast %28 : vector<1x8x16xbf16> to vector<8x16xbf16>
    %cst_19 = arith.constant dense<0.000000e+00> : vector<32x16xf32>
    %30 = tpu.matmul %23, %29, %cst_19 {dimension_numbers = #tpu.dot_dimension_numbers<[1], [0], [0], [1], [0, 0, 1, 1], [], []>} : vector<32x8xbf16>, vector<8x16xbf16>, vector<32x16xf32> -> vector<32x16xf32>
    %31 = arith.addf %27, %30 : vector<32x16xf32>
    %32 = vector.extract_strided_slice %0 {offsets = [0, 1, 0, 0, 0], sizes = [2, 4, 1, 5, 16], strides = [1, 1, 1, 1, 1]} : vector<2x5x2x5x16xbf16> to vector<2x4x1x5x16xbf16>
    %33 = vector.shape_cast %32 : vector<2x4x1x5x16xbf16> to vector<2x4x5x16xbf16>
    %34 = vector.extract_strided_slice %33 {offsets = [0, 0, 0, 0], sizes = [2, 4, 4, 16], strides = [1, 1, 1, 1]} : vector<2x4x5x16xbf16> to vector<2x4x4x16xbf16>
    %35 = vector.shape_cast %34 : vector<2x4x4x16xbf16> to vector<32x16xbf16>
    %36 = vector.extract_strided_slice %33 {offsets = [0, 0, 1, 0], sizes = [2, 4, 4, 8], strides = [1, 1, 1, 1]} : vector<2x4x5x16xbf16> to vector<2x4x4x8xbf16>
    %37 = vector.shape_cast %36 : vector<2x4x4x8xbf16> to vector<32x8xbf16>
    %c2 = arith.constant 2 : index
    %c0_20 = arith.constant 0 : index
    %c0_21 = arith.constant 0 : index
    %38 = vector.load %arg2[%c2, %c0_20, %c0_21] : memref<3x16x16xbf16, #tpu.memory_space<vmem>>, vector<1x16x16xbf16>
    %39 = vector.shape_cast %38 : vector<1x16x16xbf16> to vector<16x16xbf16>
    %cst_22 = arith.constant dense<0.000000e+00> : vector<32x16xf32>
    %40 = tpu.matmul %35, %39, %cst_22 {dimension_numbers = #tpu.dot_dimension_numbers<[1], [0], [0], [1], [0, 0, 1, 1], [], []>} : vector<32x16xbf16>, vector<16x16xbf16>, vector<32x16xf32> -> vector<32x16xf32>
    %41 = arith.addf %31, %40 : vector<32x16xf32>
    %c2_23 = arith.constant 2 : index
    %c0_24 = arith.constant 0 : index
    %c0_25 = arith.constant 0 : index
    %42 = vector.load %arg3[%c2_23, %c0_24, %c0_25] : memref<3x8x16xbf16, #tpu.memory_space<vmem>>, vector<1x8x16xbf16>
    %43 = vector.shape_cast %42 : vector<1x8x16xbf16> to vector<8x16xbf16>
    %cst_26 = arith.constant dense<0.000000e+00> : vector<32x16xf32>
    %44 = tpu.matmul %37, %43, %cst_26 {dimension_numbers = #tpu.dot_dimension_numbers<[1], [0], [0], [1], [0, 0, 1, 1], [], []>} : vector<32x8xbf16>, vector<8x16xbf16>, vector<32x16xf32> -> vector<32x16xf32>
    %45 = arith.addf %41, %44 : vector<32x16xf32>
    %cst_27 = arith.constant 0.000000e+00 : f32
    %46 = vector.broadcast %cst_27 : f32 to vector<32x16xf32>
    %47 = arith.cmpf oge, %45, %46 : vector<32x16xf32>
    %cst_28 = arith.constant 0.00999999977 : f32
    %48 = vector.broadcast %cst_28 : f32 to vector<32x16xf32>
    %49 = arith.mulf %48, %45 : vector<32x16xf32>
    %50 = arith.select %47, %45, %49 : vector<32x16xi1>, vector<32x16xf32>
    %51 = vector.shape_cast %50 : vector<32x16xf32> to vector<2x4x4x16xf32>
    %52 = arith.truncf %51 : vector<2x4x4x16xf32> to vector<2x4x4x16xbf16>
    %c0_29 = arith.constant 0 : index
    %c0_30 = arith.constant 0 : index
    %c0_31 = arith.constant 0 : index
    %c0_32 = arith.constant 0 : index
    %53 = vector.load %arg5[%c0_29, %c0_30, %c0_31, %c0_32] : memref<2x4x4x16xbf16, #tpu.memory_space<vmem>>, vector<2x4x4x16xbf16>
    tpu.vector_store %arg5[%c0_29, %c0_30, %c0_31, %c0_32], %52 {strides = array<i32>} : memref<2x4x4x16xbf16, #tpu.memory_space<vmem>>, vector<2x4x4x16xbf16>,
    return
  }
  func.func @transform_0(%arg0: i32) -> (i32, i32, i32, i32, i32) {
    %c0_i32 = arith.constant 0 : i32
    %c0_i32_0 = arith.constant 0 : i32
    %c0_i32_1 = arith.constant 0 : i32
    %c0_i32_2 = arith.constant 0 : i32
    %c0_i32_3 = arith.constant 0 : i32
    return %arg0, %c0_i32, %c0_i32_0, %c0_i32_1, %c0_i32_2 : i32, i32, i32, i32, i32
  }
  func.func @transform_1(%arg0: i32) -> (i32, i32, i32) {
    %c0_i32 = arith.constant 0 : i32
    %c0_i32_0 = arith.constant 0 : i32
    %c0_i32_1 = arith.constant 0 : i32
    %c0_i32_2 = arith.constant 0 : i32
    return %c0_i32, %c0_i32_0, %c0_i32_1 : i32, i32, i32
  }
  func.func @transform_2(%arg0: i32) -> (i32, i32, i32) {
    %c0_i32 = arith.constant 0 : i32
    %c0_i32_0 = arith.constant 0 : i32
    %c0_i32_1 = arith.constant 0 : i32
    %c0_i32_2 = arith.constant 0 : i32
    return %c0_i32, %c0_i32_0, %c0_i32_1 : i32, i32, i32
  }
  func.func @transform_3(%arg0: i32) -> (i32, i32) {
    %c0_i32 = arith.constant 0 : i32
    %c0_i32_0 = arith.constant 0 : i32
    %c0_i32_1 = arith.constant 0 : i32
    return %c0_i32, %c0_i32_0 : i32, i32
  }
  func.func @transform_4(%arg0: i32) -> (i32, i32, i32, i32) {
    %c0_i32 = arith.constant 0 : i32
    %c0_i32_0 = arith.constant 0 : i32
    %c0_i32_1 = arith.constant 0 : i32
    %c0_i32_2 = arith.constant 0 : i32
    return %arg0, %c0_i32, %c0_i32_0, %c0_i32_1 : i32, i32, i32, i32
  }
}

module attributes {stable_mosaic.version = 11 : i64} {
  func.func @_head2_kernel(%arg0: i32, %arg1: memref<2x256xbf16, #tpu.memory_space<vmem>>, %arg2: memref<256x128xbf16, #tpu.memory_space<vmem>>, %arg3: memref<1x128xf32, #tpu.memory_space<vmem>>, %arg4: memref<128x128xbf16, #tpu.memory_space<vmem>>, %arg5: memref<1x128xf32, #tpu.memory_space<vmem>>, %arg6: memref<2x1xf32, #tpu.memory_space<vmem>>) attributes {dimension_semantics = [#tpu.dimension_semantics<parallel>], iteration_bounds = array<i64: 1>, scalar_prefetch = 0 : i64, scratch_operands = 0 : i64, tpu.core_type = #tpu.core_type<tc>, window_params = [{transform_indices = @transform_0, window_bounds = array<i64: 2, 256>}, {pipeline_mode = #tpu.pipeline_mode<synchronous>, transform_indices = @transform_1, window_bounds = array<i64: 256, 128>}, {pipeline_mode = #tpu.pipeline_mode<synchronous>, transform_indices = @transform_2, window_bounds = array<i64: 1, 128>}, {pipeline_mode = #tpu.pipeline_mode<synchronous>, transform_indices = @transform_3, window_bounds = array<i64: 128, 128>}, {pipeline_mode = #tpu.pipeline_mode<synchronous>, transform_indices = @transform_4, window_bounds = array<i64: 1, 128>}, {transform_indices = @transform_5, window_bounds = array<i64: 2, 1>}]} {
    %c0 = arith.constant 0 : index
    %c0_0 = arith.constant 0 : index
    %0 = vector.load %arg1[%c0, %c0_0] : memref<2x256xbf16, #tpu.memory_space<vmem>>, vector<2x256xbf16>
    %c0_1 = arith.constant 0 : index
    %c0_2 = arith.constant 0 : index
    %1 = vector.load %arg2[%c0_1, %c0_2] : memref<256x128xbf16, #tpu.memory_space<vmem>>, vector<256x128xbf16>
    %cst = arith.constant dense<0.000000e+00> : vector<2x128xf32>
    %2 = tpu.matmul %0, %1, %cst {dimension_numbers = #tpu.dot_dimension_numbers<[1], [0], [0], [1], [0, 0, 1, 1], [], []>} : vector<2x256xbf16>, vector<256x128xbf16>, vector<2x128xf32> -> vector<2x128xf32>
    %c0_3 = arith.constant 0 : index
    %c0_4 = arith.constant 0 : index
    %3 = vector.load %arg3[%c0_3, %c0_4] : memref<1x128xf32, #tpu.memory_space<vmem>>, vector<1x128xf32>
    %4 = vector.broadcast %3 : vector<1x128xf32> to vector<2x128xf32>
    %5 = arith.addf %2, %4 : vector<2x128xf32>
    %cst_5 = arith.constant 0.000000e+00 : f32
    %6 = vector.broadcast %cst_5 : f32 to vector<2x128xf32>
    %7 = arith.cmpf oge, %5, %6 : vector<2x128xf32>
    %cst_6 = arith.constant 0.00999999977 : f32
    %8 = vector.broadcast %cst_6 : f32 to vector<2x128xf32>
    %9 = arith.mulf %8, %5 : vector<2x128xf32>
    %10 = arith.select %7, %5, %9 : vector<2x128xi1>, vector<2x128xf32>
    %11 = arith.truncf %10 : vector<2x128xf32> to vector<2x128xbf16>
    %c0_7 = arith.constant 0 : index
    %c0_8 = arith.constant 0 : index
    %12 = vector.load %arg4[%c0_7, %c0_8] : memref<128x128xbf16, #tpu.memory_space<vmem>>, vector<128x128xbf16>
    %cst_9 = arith.constant dense<0.000000e+00> : vector<2x128xf32>
    %13 = tpu.matmul %11, %12, %cst_9 {dimension_numbers = #tpu.dot_dimension_numbers<[1], [0], [0], [1], [0, 0, 1, 1], [], []>} : vector<2x128xbf16>, vector<128x128xbf16>, vector<2x128xf32> -> vector<2x128xf32>
    %c0_10 = arith.constant 0 : index
    %c0_11 = arith.constant 0 : index
    %14 = vector.load %arg5[%c0_10, %c0_11] : memref<1x128xf32, #tpu.memory_space<vmem>>, vector<1x128xf32>
    %15 = vector.broadcast %14 : vector<1x128xf32> to vector<2x128xf32>
    %16 = arith.addf %13, %15 : vector<2x128xf32>
    %17 = vector.extract_strided_slice %16 {offsets = [0, 0], sizes = [2, 1], strides = [1, 1]} : vector<2x128xf32> to vector<2x1xf32>
    %cst_12 = arith.constant 0.000000e+00 : f32
    %18 = vector.broadcast %cst_12 : f32 to vector<2x1xf32>
    %19 = arith.subf %18, %17 : vector<2x1xf32>
    %20 = math.exp %19 : vector<2x1xf32>
    %cst_13 = arith.constant 1.000000e+00 : f32
    %21 = vector.broadcast %cst_13 : f32 to vector<2x1xf32>
    %22 = arith.addf %21, %20 : vector<2x1xf32>
    %cst_14 = arith.constant 1.000000e+00 : f32
    %23 = vector.broadcast %cst_14 : f32 to vector<2x1xf32>
    %24 = arith.divf %23, %22 : vector<2x1xf32>
    %c0_15 = arith.constant 0 : index
    %c0_16 = arith.constant 0 : index
    %25 = vector.load %arg6[%c0_15, %c0_16] : memref<2x1xf32, #tpu.memory_space<vmem>>, vector<2x1xf32>
    tpu.vector_store %arg6[%c0_15, %c0_16], %24 {strides = array<i32>} : memref<2x1xf32, #tpu.memory_space<vmem>>, vector<2x1xf32>,
    return
  }
  func.func @transform_0(%arg0: i32) -> (i32, i32) {
    %c0_i32 = arith.constant 0 : i32
    %c0_i32_0 = arith.constant 0 : i32
    return %arg0, %c0_i32 : i32, i32
  }
  func.func @transform_1(%arg0: i32) -> (i32, i32) {
    %c0_i32 = arith.constant 0 : i32
    %c0_i32_0 = arith.constant 0 : i32
    %c0_i32_1 = arith.constant 0 : i32
    return %c0_i32, %c0_i32_0 : i32, i32
  }
  func.func @transform_2(%arg0: i32) -> (i32, i32) {
    %c0_i32 = arith.constant 0 : i32
    %c0_i32_0 = arith.constant 0 : i32
    %c0_i32_1 = arith.constant 0 : i32
    return %c0_i32, %c0_i32_0 : i32, i32
  }
  func.func @transform_3(%arg0: i32) -> (i32, i32) {
    %c0_i32 = arith.constant 0 : i32
    %c0_i32_0 = arith.constant 0 : i32
    %c0_i32_1 = arith.constant 0 : i32
    return %c0_i32, %c0_i32_0 : i32, i32
  }
  func.func @transform_4(%arg0: i32) -> (i32, i32) {
    %c0_i32 = arith.constant 0 : i32
    %c0_i32_0 = arith.constant 0 : i32
    %c0_i32_1 = arith.constant 0 : i32
    return %c0_i32, %c0_i32_0 : i32, i32
  }
  func.func @transform_5(%arg0: i32) -> (i32, i32) {
    %c0_i32 = arith.constant 0 : i32
    %c0_i32_0 = arith.constant 0 : i32
    return %arg0, %c0_i32 : i32, i32
  }
}

</mosaic_0001>

<bundles_post_ra>
// kernel: a_call__.5
= control target key start
LH: loop header
LB: loop body
LE: loop exit
PB: predicated region body
PF: predicated region fallthrough
CT: control target
= control target key end

     0   :  { %vm289_vm4 = vcmask 1024   ;;  %s535_s1 = inlined_call_operand.vmem [shape: bf16[256,128], index: 1, kind: input, shape index: {}]   ;;  %s536_s0 = inlined_call_operand.vmem [shape: bf16[2,256], index: 0, kind: input, shape index: {}]   ;;  %s537_s3 = inlined_call_operand.vmem [shape: bf16[128,128], index: 3, kind: input, shape index: {}]   ;;  %s538_s2 = inlined_call_operand.vmem [shape: f32[1,128], index: 2, kind: input, shape index: {}]   ;;  %s539_s4 = inlined_call_operand.vmem [shape: f32[1,128], index: 4, kind: input, shape index: {}]   ;;  %s540_s5 = inlined_call_operand.vmem [shape: f32[2,1], index: 5, kind: output, shape index: {}]  }
   0x1   :  { %v398_v0 = vld [vmem:[%s535_s1 + $0x38] sm:$0xff]  ;;  %v397_v2 = vld [vmem:[%s535_s1 + $0x30] sm:$0xff]  ;;  %v20_v4 = vld [vmem:[%s536_s0] sm:$0x3] }
   0x2   :  { %v406_v1 = vld [vmem:[%s535_s1 + $0x78] sm:$0xff]  ;;  %159 = vmatpush.bf16.msra.mxu0 %v398_v0  ;;  %v405_v3 = vld [vmem:[%s535_s1 + $0x70] sm:$0xff]  ;;  %v396_v6 = vld [vmem:[%s535_s1 + $0x28] sm:$0xff]  ;;  %58 = vst [vmem:[#allocation1] ss:$9 sm:$0xff] %v20_v4 }
   0x3   :  { %172 = vmatpush.bf16.msra.mxu1 %v406_v1  ;;  %v414_v5 = vld [vmem:[%s537_s3 + $0x38] sm:$0xff]  ;;  %v404_v7 = vld [vmem:[%s535_s1 + $0x68] sm:$0xff]  ;;  %v413_v8 = vld [vmem:[%s537_s3 + $0x30] sm:$0xff] }
   0x4   :  { %257 = vmatpush.bf16.msra.mxu2 %v414_v5  ;;  %v395_v9 = vld [vmem:[%s535_s1 + $0x20] sm:$0xff]  ;;  %v412_v11 = vld [vmem:[%s537_s3 + $0x28] sm:$0xff]  ;;  %v394_v12 = vld [vmem:[%s535_s1 + $0x18] sm:$0xff] }
   0x5   :  { %v403_v10 = vld [vmem:[%s535_s1 + $0x60] sm:$0xff]  ;;  %v402_v13 = vld [vmem:[%s535_s1 + $0x58] sm:$0xff]  ;;  %v393_v15 = vld [vmem:[%s535_s1 + $0x10] sm:$0xff] }
   0x6   :  { %160 = vmatpush.bf16.msra.mxu0 %v397_v2  ;;  %v411_v14 = vld [vmem:[%s537_s3 + $0x20] sm:$0xff]  ;;  %v401_v16 = vld [vmem:[%s535_s1 + $0x50] sm:$0xff]  ;;  %v410_v17 = vld [vmem:[%s537_s3 + $0x18] sm:$0xff] }
   0x7   :  { %173 = vmatpush.bf16.msra.mxu1 %v405_v3  ;;  %v392_v18 = vld [vmem:[%s535_s1 + $0x8] sm:$0xff]  ;;  %v409_v20 = vld [vmem:[%s537_s3 + $0x10] sm:$0xff]  ;;  %v391_v21 = vld [vmem:[%s535_s1] sm:$0xff] }
   0x8   :  { %258 = vmatpush.bf16.msra.mxu2 %v413_v8  ;;  %v400_v19 = vld [vmem:[%s535_s1 + $0x48] sm:$0xff]  ;;  %v399_v22 = vld [vmem:[%s535_s1 + $0x40] sm:$0xff] }
   0x9   :  { %v59_v23 = vld [vmem:[#allocation1] sm:$0xff]  ;;  %v60_v24 = vld [vmem:[#allocation1 + $0x9] sm:$0xff] }
   0xa   :  { %161 = vmatpush.bf16.msra.mxu0 %v396_v6  ;;  %v408_v25 = vld [vmem:[%s537_s3 + $0x8] sm:$0xff]  ;;  %v407_v26 = vld [vmem:[%s537_s3] sm:$0xff] }
   0xb   :  { %174 = vmatpush.bf16.msra.mxu1 %v404_v7  ;;  %v415_v27 = vld [vmem:[%s538_s2] ss:$0 sm:$0xff] }
   0xc   :  { %259 = vmatpush.bf16.msra.mxu2 %v412_v11  ;;  %v416_v37 = vld [vmem:[%s539_s4] ss:$0 sm:$0xff] }
   0xe   :  { %162 = vmatpush.bf16.msra.mxu0 %v395_v9 }
   0xf   :  { %175 = vmatpush.bf16.msra.mxu1 %v403_v10 }
  0x10   :  { %260 = vmatpush.bf16.msra.mxu2 %v411_v14 }
  0x12   :  { %163 = vmatpush.bf16.msra.mxu0 %v394_v12 }
  0x13   :  { %176 = vmatpush.bf16.msra.mxu1 %v402_v13 }
  0x14   :  { %261 = vmatpush.bf16.msra.mxu2 %v410_v17 }
  0x16   :  { %164 = vmatpush.bf16.msra.mxu0 %v393_v15 }
  0x17   :  { %177 = vmatpush.bf16.msra.mxu1 %v401_v16 }
  0x18   :  { %262 = vmatpush.bf16.msra.mxu2 %v409_v20 }
  0x1a   :  { %165 = vmatpush.bf16.msra.mxu0 %v392_v18 }
  0x1b   :  { %178 = vmatpush.bf16.msra.mxu1 %v400_v19 }
  0x1c   :  { %263 = vmatpush.bf16.msra.mxu2 %v408_v25 }
  0x1e   :  { %166 = vmatpush.bf16.msra.mxu0 %v391_v21 }
  0x1f   :  { %179 = vmatpush.bf16.msra.mxu1 %v399_v22 }
  0x20   :  { %264 = vmatpush.bf16.msra.mxu2 %v407_v26 }
  0x21   :  { %167 = vmatmul.bf16.vlgmr.msra.gmra.mxu0 %v59_v23 }
  0x22   :  { %180 = vmatmul.bf16.vlgmr.msra.gmra.mxu1 %v60_v24 }
  0x9e   :  { %v168_v28 = vpop.f32.mrf.mxu0 }
  0x9f   :  { %v181_v29 = vpop.f32.mrf.mxu1  ;;  %v169_v30 = vadd.f32 %v415_v27, %v168_v28 }
  0xa1   :  { %v182_v31 = vadd.f32 %v181_v29, %v169_v30 }
  0xa3   :  { %v186_v32 = vmul.f32 0.01, %v182_v31  ;;  %vm185_vm0 = vcmp.ge.f32.partialorder %v182_v31, 0.0 }
  0xa5   :  { %v187_v33 = vsel %vm185_vm0, %v182_v31, %v186_v32 }
  0xa6   :  { %v170_v34 = vpop.f32.mrf.mxu0  ;;  %v188_v36 = vpack.c.bf16 %v187_v33, %v187_v33 }
  0xa7   :  { %v183_v35 = vpop.f32.mrf.mxu1 }
  0xa8   :  { %265 = vmatmul.bf16.vlgmr.msra.gmra.mxu2 %v188_v36 }
 0x12b   :  { %v266_v38 = vpop.f32.mrf.mxu2 }
 0x12c   :  { %v267_v39 = vadd.f32 %v416_v37, %v266_v38 }
 0x12e   :  { %v270_v40 = vsub.f32 0.0, %v267_v39 }
 0x130   :  { %v271_v41 = vmul.f32 1.442695, %v270_v40 }
 0x132   :  { %417 = vpow2.f32 %v271_v41 }
 0x133   :  { %v268_v42 = vpop.f32.mrf.mxu2 }
 0x138   :  { %v418_v43 = vpop.eup %417 }
 0x139   :  { %v273_v44 = vadd.f32 1.0, %v418_v43 }
 0x13b   :  { %419 = vrcp.f32 %v273_v44  ;;  %v285_v48 = vand.u32 2147483648, %v273_v44  ;;  %v283_v50 = vand.u32 2147483647, %v273_v44  ;;  %vm279_vm2 = vweird.f32 %v273_v44 }
 0x13d   :  { %v286_v52 = vor.u32 1.1754944e-38, %v285_v48  ;;  %vm284_vm5 = vcmp.eq.f32.partialorder %v283_v50, 8.507059e+37 }
 0x141   :  { %v420_v45 = vpop.eup %419 }
 0x142   :  { %v275_v46 = vmul.f32 %v420_v45, %v273_v44  ;;  %vm280_vm1 = vweird.f32 %v420_v45 }
 0x143   :  { %vm281_vm3 = vmor %vm279_vm2, %vm280_vm1 }
 0x144   :  { %v276_v47 = vsub.f32 1.0, %v275_v46 }
 0x146   :  { %v277_v49 = vmul.f32 %v420_v45, %v276_v47 }
 0x148   :  { %v278_v51 = vadd.f32 %v420_v45, %v277_v49 }
 0x14a   :  { %v282_v53 = vsel %vm281_vm3, %v420_v45, %v278_v51 }
 0x14b   :  { %v287_v54 = vsel %vm284_vm5, %v286_v52, %v282_v53 }
 0x14c   :  { %290 = vst.msk [vmem:[%s540_s5] sm:$0x3] %vm289_vm4, %v287_v54 }

// kernel: a_call__.4
= control target key start
LH: loop header
LB: loop body
LE: loop exit
PB: predicated region body
PF: predicated region fallthrough
CT: control target
= control target key end

     0   :  { %vm301_vm0 = vcmask 1043456   ;;  %vm56_vm1 = vcmask 1041408   ;;  %vm60_vm2 = vcmask 1043458   ;;  %vm242_vm3 = vcmask 130048   ;;  %s1197_s1 = inlined_call_operand.vmem [shape: bf16[3,16,16], index: 1, kind: input, shape index: {}]   ;;  %s1198_s0 = inlined_call_operand.vmem [shape: bf16[2,5,2,5,16], index: 0, kind: input, shape index: {}]   ;;  %s1199_s2 = inlined_call_operand.vmem [shape: bf16[3,8,16], index: 2, kind: input, shape index: {}]   ;;  %s1200_s3 = inlined_call_operand.vmem [shape: f32[1,16], index: 3, kind: input, shape index: {}]   ;;  %s1201_s4 = inlined_call_operand.vmem [shape: bf16[2,4,4,16], index: 4, kind: output, shape index: {}]  }
   0x1   :  { %v827_v0 = vld [vmem:[%s1197_s1] sm:$0xff]  ;;  %v27_v1 = vld [vmem:[%s1198_s0 + $0x28] sm:$0x7]  ;;  %v867_v2 = vld [vmem:[%s1198_s0 + $0x30] sm:$0x7]  ;;  %vm296_vm11 = vcmask 64512  }
   0x2   :  { %v872_v3 = vld [vmem:[%s1198_s0 + $0x38] sm:$0x7]  ;;  %v877_v4 = vld [vmem:[%s1198_s0 + $0x40] sm:$0x7]  ;;  %227 = vst [vmem:[#allocation1 + $0x20] ss:$4 sm:$0xff] %v27_v1  ;;  %830 = vmatpush.bf16.msra.mxu2 %v827_v0  ;;  %254 = vmatpush.bf16.msra.mxu0 %v827_v0 }
   0x3   :  { %229 = vst [vmem:[#allocation1 + $0x21] ss:$4 sm:$0xff] %v867_v2  ;;  %v270_v5 = vld [vmem:[%s1199_s2] sm:$0xf]  ;;  %v52_v6 = vrot.slane %v27_v1, 2  ;;  %v53_v7 = vrot.slane %v867_v2, 2 }
   0x4   :  { %231 = vst [vmem:[#allocation1 + $0x22] ss:$4 sm:$0xff] %v872_v3  ;;  %v303_v8 = vsel %vm301_vm0, %v270_v5, 0  ;;  %v54_v9 = vrot.slane %v872_v3, 2  ;;  %v55_v10 = vrot.slane %v877_v4, 2  ;;  %v828_v11 = vld [vmem:[%s1197_s1 + $0x8] sm:$0xff] }
   0x5   :  { %233 = vst [vmem:[#allocation1 + $0x23] ss:$4 sm:$0xff] %v877_v4  ;;  %831 = vmatpush.bf16.msra.mxu3 %v303_v8  ;;  %v84_v12 = vsel %vm56_vm1, %v27_v1, %v52_v6  ;;  %v85_v13 = vsel %vm60_vm2, %v27_v1, %v52_v6  ;;  %v90_v14 = vsel %vm56_vm1, %v867_v2, %v53_v7  ;;  %vm106_vm4 = vsmask.f32 1280  ;;  %v905_v19 = vld [vmem:[%s1198_s0] sm:$0x7] }
   0x6   :  { %312 = vmatpush.bf16.msra.mxu1 %v303_v8  ;;  %v87_v15 = vrot.slane %v85_v13, 2  ;;  %v91_v16 = vsel %vm60_vm2, %v867_v2, %v53_v7  ;;  %v96_v17 = vsel %vm56_vm1, %v872_v3, %v54_v9  ;;  %v97_v18 = vsel %vm60_vm2, %v872_v3, %v54_v9  ;;  %533 = vmatpush.bf16.msrb.mxu2 %v828_v11  ;;  %v914_v24 = vld [vmem:[%s1198_s0 + $0x8] sm:$0x7]  ;;  %v920_v27 = vld [vmem:[%s1198_s0 + $0x10] sm:$0x7] }
   0x7   :  { %v93_v20 = vrot.slane %v91_v16, 2  ;;  %v99_v21 = vrot.slane %v97_v18, 2  ;;  %v102_v22 = vsel %vm56_vm1, %v877_v4, %v55_v10  ;;  %v103_v23 = vsel %vm60_vm2, %v877_v4, %v55_v10  ;;  %219 = vst [vmem:[#allocation1] ss:$4 sm:$0xff] %v905_v19  ;;  %v926_v35 = vld [vmem:[%s1198_s0 + $0x18] sm:$0x7] }
   0x8   :  { %v105_v25 = vrot.slane %v103_v23, 2  ;;  %vm107_vm5 = vsmask.f32 3336  ;;  %vm109_vm6 = vsmask.f32 5392  ;;  %v165_v26 = vshrl.u32 %v84_v12, 16 }
   0x9   :  { %vm108_vm7 = vmor %vm106_vm4, %vm107_vm5  ;;  %vm111_vm8 = vsmask.f32 7448  ;;  %v168_v28 = vshll.u32 %v84_v12, 16  ;;  %v174_v29 = vshll.u32 %v87_v15, 16  ;;  %v178_v30 = vshrl.u32 %v90_v14, 16 }
   0xa   :  { %v167_v31 = vrot.slane %v165_v26, 6  ;;  %v181_v32 = vshll.u32 %v90_v14, 16  ;;  %v187_v33 = vshll.u32 %v93_v20, 16  ;;  %v191_v34 = vshrl.u32 %v96_v17, 16  ;;  %221 = vst [vmem:[#allocation1 + $0x1] ss:$4 sm:$0xff] %v914_v24  ;;  %vm929_vm9 = vmor %vm108_vm7, %vm109_vm6 }
   0xb   :  { %v170_v37 = vrot.slane %v168_v28, 7  ;;  %v176_v38 = vrot.slane %v174_v29, 7  ;;  %v180_v39 = vrot.slane %v178_v30, 6  ;;  %v194_v40 = vshll.u32 %v96_v17, 16  ;;  %223 = vst [vmem:[#allocation1 + $0x2] ss:$4 sm:$0xff] %v920_v27  ;;  %vm939_vm10 = vmor %vm929_vm9, %vm111_vm8 }
   0xc   :  { %v235_v41 = vld.sshfl [vmem:[#allocation1 + $0x20] sm:$0xff pattern:$0x73625140]  ;;  %v183_v42 = vrot.slane %v181_v32, 7  ;;  %v189_v43 = vrot.slane %v187_v33, 7  ;;  %v193_v44 = vrot.slane %v191_v34, 6 }
   0xd   :  { %802 = vmatmul.msk.bf16.vlgmr.msra.gmra.mxu2 %vm242_vm3, %v235_v41  ;;  %v171_v45 = vor.u32 %v170_v37, %v167_v31  ;;  %v196_v46 = vrot.slane %v194_v40, 7  ;;  %v200_v47 = vshll.u32 %v99_v21, 16  ;;  %v204_v48 = vshrl.u32 %v102_v22, 16  ;;  %225 = vst [vmem:[#allocation1 + $0x3] ss:$4 sm:$0xff] %v926_v35 }
   0xe   :  { %v184_v50 = vor.u32 %v183_v42, %v180_v39  ;;  %v207_v51 = vshll.u32 %v102_v22, 16  ;;  %v213_v52 = vshll.u32 %v105_v25, 16  ;;  %v813_v53 = vld [vmem:[%s1199_s2 + $0x4] sm:$0xf]  ;;  %v48_v54 = vrot.slane %v905_v19, 2 }
   0xf   :  { %v172_v55 = vrot.slane %v171_v45, 2  ;;  %v197_v56 = vor.u32 %v196_v46, %v193_v44  ;;  %v202_v57 = vrot.slane %v200_v47, 7  ;;  %v206_v58 = vrot.slane %v204_v48, 6  ;;  %v996_v48 = vld [vmem:[%s1198_s0 + $0xc] sm:$0x7] }
  0x10   :  { %v185_v59 = vrot.slane %v184_v50, 2  ;;  %v209_v60 = vrot.slane %v207_v51, 7  ;;  %v215_v61 = vrot.slane %v213_v52, 7  ;;  %v581_v62 = vsel %vm301_vm0, %v813_v53, 0 }
  0x11   :  { %v177_v63 = vsel %vm939_vm10, %v172_v55, %v176_v38  ;;  %v198_v0 = vrot.slane %v197_v56, 2  ;;  %590 = vmatpush.bf16.msrb.mxu3 %v581_v62  ;;  %v49_v1 = vrot.slane %v914_v24, 2  ;;  %v50_v5 = vrot.slane %v920_v27, 2  ;;  %v829_v38 = vld [vmem:[%s1197_s1 + $0x10] sm:$0xff] }
  0x12   :  { %v954_v6 = vsel %vm939_vm10, %v185_v59, %v189_v43  ;;  %v210_v7 = vor.u32 %v209_v60, %v206_v58  ;;  %284 = vst [vmem:[#allocation1 + $0x20] ss:$4 sm:$0xff] %v177_v63  ;;  %v51_v8 = vrot.slane %v926_v35, 2  ;;  %v59_v9 = vsel %vm56_vm1, %v905_v19, %v48_v54  ;;  %v991_v43 = vld [vmem:[%s1198_s0 + $0x4] sm:$0x7]  ;;  %685 = vmatpush.bf16.msrb.mxu0 %v829_v38 }
  0x13   :  { %v961_v10 = vsel %vm939_vm10, %v198_v0, %v202_v57  ;;  %287 = vst [vmem:[#allocation1 + $0x21] ss:$4 sm:$0xff] %v954_v6  ;;  %v61_v11 = vsel %vm60_vm2, %v905_v19, %v48_v54  ;;  %v66_v12 = vsel %vm56_vm1, %v914_v24, %v49_v1  ;;  %v67_v13 = vsel %vm60_vm2, %v914_v24, %v49_v1  ;;  %v1001_v54 = vld [vmem:[%s1198_s0 + $0x14] sm:$0x7]  ;;  %v1006_v58 = vld [vmem:[%s1198_s0 + $0x1c] sm:$0x7] }
  0x14   :  { %v211_v14 = vrot.slane %v210_v7, 2  ;;  %290 = vst [vmem:[#allocation1 + $0x22] ss:$4 sm:$0xff] %v961_v10  ;;  %v234_v15 = vld.sshfl [vmem:[#allocation1] sm:$0xff pattern:$0x73625140]  ;;  %v72_v16 = vsel %vm56_vm1, %v920_v27, %v50_v5  ;;  %v73_v17 = vsel %vm60_vm2, %v920_v27, %v50_v5  ;;  %v78_v18 = vsel %vm56_vm1, %v926_v35, %v51_v8 }
  0x15   :  { %801 = vmatmul.msk.bf16.vlgmr.msra.gmra.mxu0 %vm242_vm3, %v234_v15  ;;  %v63_v19 = vrot.slane %v61_v11, 2  ;;  %v69_v20 = vrot.slane %v67_v13, 2  ;;  %v75_v21 = vrot.slane %v73_v17, 2  ;;  %v79_v22 = vsel %vm60_vm2, %v926_v35, %v51_v8 }
  0x16   :  { %v982_v23 = vsel %vm939_vm10, %v211_v14, %v215_v61  ;;  %v81_v25 = vrot.slane %v79_v22, 2  ;;  %v113_v26 = vshrl.u32 %v59_v9, 16  ;;  %v116_v28 = vshll.u32 %v59_v9, 16 }
  0x17   :  { %293 = vst [vmem:[#allocation1 + $0x23] ss:$4 sm:$0xff] %v982_v23  ;;  %v122_v29 = vshll.u32 %v63_v19, 16  ;;  %v126_v30 = vshrl.u32 %v66_v12, 16  ;;  %v129_v31 = vshll.u32 %v66_v12, 16  ;;  %v135_v32 = vshll.u32 %v69_v20, 16 }
  0x18   :  { %v115_v33 = vrot.slane %v113_v26, 6  ;;  %v118_v34 = vrot.slane %v116_v28, 7  ;;  %v139_v36 = vshrl.u32 %v72_v16, 16  ;;  %v142_v37 = vshll.u32 %v72_v16, 16 }
  0x19   :  { %v124_v39 = vrot.slane %v122_v29, 7  ;;  %v128_v40 = vrot.slane %v126_v30, 6  ;;  %v131_v41 = vrot.slane %v129_v31, 7  ;;  %v137_v42 = vrot.slane %v135_v32, 7  ;;  %v1049_v30 = vld [vmem:[%s1198_s0 + $0x34] sm:$0x7] }
  0x1a   :  { %v119_v44 = vor.u32 %v118_v34, %v115_v33  ;;  %v141_v45 = vrot.slane %v139_v36, 6  ;;  %v144_v46 = vrot.slane %v142_v37, 7  ;;  %v148_v47 = vshll.u32 %v75_v21, 16  ;;  %v1059_v36 = vld [vmem:[%s1198_s0 + $0x3c] sm:$0x7] }
  0x1b   :  { %v132_v50 = vor.u32 %v131_v41, %v128_v40  ;;  %v152_v51 = vshrl.u32 %v78_v18, 16  ;;  %v155_v52 = vshll.u32 %v78_v18, 16  ;;  %v161_v53 = vshll.u32 %v81_v25, 16  ;;  %v1035_v18 = vld [vmem:[%s1198_s0 + $0x2c] sm:$0x7] }
  0x1c   :  { %v120_v55 = vrot.slane %v119_v44, 2  ;;  %v145_v56 = vor.u32 %v144_v46, %v141_v45  ;;  %v150_v57 = vrot.slane %v148_v47, 7  ;;  %v336_v59 = vrot.slane %v991_v43, 2  ;;  %v34_v46 = vld [vmem:[%s1198_s0 + $0x44] sm:$0x7] }
  0x1d   :  { %v133_v60 = vrot.slane %v132_v50, 2  ;;  %v154_v61 = vrot.slane %v152_v51, 6  ;;  %v157_v62 = vrot.slane %v155_v52, 7  ;;  %v163_v63 = vrot.slane %v161_v53, 7  ;;  %v824_v51 = vld [vmem:[%s1199_s2 + $0x8] sm:$0xf] }
  0x1e   :  { %v295_v0 = vld.sshfl [vmem:[#allocation1 + $0x20] sm:$0xff pattern:$0x73625140]  ;;  %v125_v1 = vsel %vm939_vm10, %v120_v55, %v124_v39  ;;  %v146_v5 = vrot.slane %v145_v56, 2  ;;  %v337_v7 = vrot.slane %v996_v48, 2  ;;  %v338_v8 = vrot.slane %v1001_v54, 2 }
  0x1f   :  { %804 = vmatmul.msk.bf16.vlgmr.msra.gmra.mxu3 %vm296_vm11, %v295_v0  ;;  %v1016_v9 = vsel %vm939_vm10, %v133_v60, %v137_v42  ;;  %v158_v11 = vor.u32 %v157_v62, %v154_v61  ;;  %272 = vst [vmem:[#allocation1] ss:$4 sm:$0xff] %v125_v1  ;;  %v339_v12 = vrot.slane %v1006_v58, 2  ;;  %v346_v13 = vsel %vm56_vm1, %v991_v43, %v336_v59  ;;  %v1073_v61 = vld [vmem:[%s1198_s0 + $0x20] sm:$0x7] }
  0x20   :  { %v1023_v14 = vsel %vm939_vm10, %v146_v5, %v150_v57  ;;  %275 = vst [vmem:[#allocation1 + $0x1] ss:$4 sm:$0xff] %v1016_v9  ;;  %v347_v15 = vsel %vm60_vm2, %v991_v43, %v336_v59  ;;  %v352_v16 = vsel %vm56_vm1, %v996_v48, %v337_v7  ;;  %v353_v17 = vsel %vm60_vm2, %v996_v48, %v337_v7 }
  0x21   :  { %v159_v19 = vrot.slane %v158_v11, 2  ;;  %278 = vst [vmem:[#allocation1 + $0x2] ss:$4 sm:$0xff] %v1023_v14  ;;  %v349_v20 = vrot.slane %v347_v15, 2  ;;  %v355_v21 = vrot.slane %v353_v17, 2  ;;  %v358_v22 = vsel %vm56_vm1, %v1001_v54, %v338_v8 }
  0x22   :  { %v359_v25 = vsel %vm60_vm2, %v1001_v54, %v338_v8  ;;  %v364_v26 = vsel %vm56_vm1, %v1006_v58, %v339_v12  ;;  %v365_v28 = vsel %vm60_vm2, %v1006_v58, %v339_v12  ;;  %v392_v29 = vshrl.u32 %v346_v13, 16  ;;  %507 = vst [vmem:[#allocation1 + $0x20] ss:$4 sm:$0xff] %v1035_v18 }
  0x23   :  { %v1054_v31 = vsel %vm939_vm10, %v159_v19, %v163_v63  ;;  %v361_v32 = vrot.slane %v359_v25, 2  ;;  %v367_v33 = vrot.slane %v365_v28, 2  ;;  %v395_v34 = vshll.u32 %v346_v13, 16  ;;  %509 = vst [vmem:[#allocation1 + $0x21] ss:$4 sm:$0xff] %v1049_v30 }
  0x24   :  { %281 = vst [vmem:[#allocation1 + $0x3] ss:$4 sm:$0xff] %v1054_v31  ;;  %v394_v37 = vrot.slane %v392_v29, 6  ;;  %v401_v38 = vshll.u32 %v349_v20, 16  ;;  %v405_v39 = vshrl.u32 %v352_v16, 16  ;;  %v408_v40 = vshll.u32 %v352_v16, 16 }
  0x25   :  { %v397_v41 = vrot.slane %v395_v34, 7  ;;  %v414_v42 = vshll.u32 %v355_v21, 16  ;;  %v418_v44 = vshrl.u32 %v358_v22, 16  ;;  %v421_v45 = vshll.u32 %v358_v22, 16  ;;  %511 = vst [vmem:[#allocation1 + $0x22] ss:$4 sm:$0xff] %v1059_v36 }
  0x26   :  { %v407_v47 = vrot.slane %v405_v39, 6  ;;  %v410_v50 = vrot.slane %v408_v40, 7  ;;  %513 = vst [vmem:[#allocation1 + $0x23] ss:$4 sm:$0xff] %v34_v46  ;;  %v427_v57 = vshll.u32 %v361_v32, 16  ;;  %v431_v59 = vshrl.u32 %v364_v26, 16 }
  0x27   :  { %v398_v52 = vor.u32 %v397_v41, %v394_v37  ;;  %v420_v53 = vrot.slane %v418_v44, 6  ;;  %v423_v55 = vrot.slane %v421_v45, 7  ;;  %v434_v60 = vshll.u32 %v364_v26, 16 }
  0x28   :  { %v411_v56 = vor.u32 %v410_v50, %v407_v47  ;;  %v403_v62 = vrot.slane %v401_v38, 7  ;;  %v416_v63 = vrot.slane %v414_v42, 7  ;;  %v727_v1 = vsel %vm301_vm0, %v824_v51, 0 }
  0x29   :  { %v424_v0 = vor.u32 %v423_v55, %v420_v53  ;;  %v399_v5 = vrot.slane %v398_v52, 2  ;;  %v433_v7 = vrot.slane %v431_v59, 6  ;;  %v436_v8 = vrot.slane %v434_v60, 7  ;;  %736 = vmatpush.bf16.msrb.mxu1 %v727_v1 }
  0x2a   :  { %v440_v11 = vshll.u32 %v367_v33, 16  ;;  %v412_v13 = vrot.slane %v411_v56, 2  ;;  %v608_v15 = vrot.slane %v1073_v61, 2  ;;  %v340_v16 = vrot.slane %v1035_v18, 2 }
  0x2b   :  { %v294_v12 = vld.sshfl [vmem:[#allocation1] sm:$0xff pattern:$0x73625140]  ;;  %v425_v17 = vrot.slane %v424_v0, 2  ;;  %v429_v19 = vrot.slane %v427_v57, 7  ;;  %v437_v20 = vor.u32 %v436_v8, %v433_v7  ;;  %v341_v21 = vrot.slane %v1049_v30, 2 }
  0x2c   :  { %803 = vmatmul.msk.bf16.vlgmr.msra.gmra.mxu1 %vm296_vm11, %v294_v12  ;;  %499 = vst [vmem:[#allocation1] ss:$4 sm:$0xff] %v991_v43  ;;  %v404_v22 = vsel %vm939_vm10, %v399_v5, %v403_v62  ;;  %v442_v25 = vrot.slane %v440_v11, 7  ;;  %v371_v26 = vsel %vm60_vm2, %v1035_v18, %v340_v16  ;;  %v417_v43 = vsel %vm939_vm10, %v412_v13, %v416_v63 }
  0x2d   :  { %501 = vst [vmem:[#allocation1 + $0x1] ss:$4 sm:$0xff] %v996_v48  ;;  %v1092_v48 = vsel %vm56_vm1, %v1073_v61, %v608_v15  ;;  %v342_v28 = vrot.slane %v1059_v36, 2  ;;  %v430_v29 = vsel %vm939_vm10, %v425_v17, %v429_v19  ;;  %v343_v32 = vrot.slane %v34_v46, 2 }
  0x2e   :  { %503 = vst [vmem:[#allocation1 + $0x2] ss:$4 sm:$0xff] %v1001_v54  ;;  %v370_v54 = vsel %vm56_vm1, %v1035_v18, %v340_v16  ;;  %v373_v33 = vrot.slane %v371_v26, 2  ;;  %v438_v34 = vrot.slane %v437_v20, 2  ;;  %v1103_v37 = vsel %vm60_vm2, %v1073_v61, %v608_v15 }
  0x2f   :  { %505 = vst [vmem:[#allocation1 + $0x3] ss:$4 sm:$0xff] %v1006_v58  ;;  %v377_v58 = vsel %vm60_vm2, %v1049_v30, %v341_v21  ;;  %v376_v38 = vsel %vm56_vm1, %v1049_v30, %v341_v21  ;;  %v382_v18 = vsel %vm56_vm1, %v1059_v36, %v342_v28  ;;  %v383_v40 = vsel %vm60_vm2, %v1059_v36, %v342_v28  ;;  %v1118_v36 = vld [vmem:[%s1198_s0 + $0x48] sm:$0x7] }
  0x30   :  { %v379_v39 = vrot.slane %v377_v58, 2  ;;  %v389_v41 = vsel %vm60_vm2, %v34_v46, %v343_v32  ;;  %v444_v42 = vshrl.u32 %v370_v54, 16  ;;  %v622_v44 = vshrl.u32 %v1092_v48, 16  ;;  %v515_v11 = vld.sshfl [vmem:[#allocation1 + $0x20] sm:$0xff pattern:$0x73625140] }
  0x31   :  { %v625_v45 = vshll.u32 %v1092_v48, 16  ;;  %v385_v47 = vrot.slane %v383_v40, 2  ;;  %v388_v50 = vsel %vm56_vm1, %v34_v46, %v343_v32  ;;  %v447_v52 = vshll.u32 %v370_v54, 16 }
  0x32   :  { %v446_v51 = vrot.slane %v444_v42, 6  ;;  %v453_v30 = vshll.u32 %v373_v33, 16  ;;  %v457_v53 = vshrl.u32 %v376_v38, 16  ;;  %v391_v55 = vrot.slane %v389_v41, 2 }
  0x33   :  { %v460_v56 = vshll.u32 %v376_v38, 16  ;;  %v466_v57 = vshll.u32 %v379_v39, 16  ;;  %v470_v59 = vshrl.u32 %v382_v18, 16  ;;  %v443_v62 = vsel %vm939_vm10, %v438_v34, %v442_v25 }
  0x34   :  { %v449_v63 = vrot.slane %v447_v52, 7  ;;  %v455_v0 = vrot.slane %v453_v30, 7  ;;  %v459_v46 = vrot.slane %v457_v53, 6  ;;  %v473_v8 = vshll.u32 %v382_v18, 16 }
  0x35   :  { %v462_v1 = vrot.slane %v460_v56, 7  ;;  %v468_v5 = vrot.slane %v466_v57, 7  ;;  %v472_v7 = vrot.slane %v470_v59, 6  ;;  %v479_v13 = vshll.u32 %v385_v47, 16 }
  0x36   :  { %v514_v60 = vld.sshfl [vmem:[#allocation1] sm:$0xff pattern:$0x73625140]  ;;  %v450_v12 = vor.u32 %v449_v63, %v446_v51  ;;  %v483_v15 = vshrl.u32 %v388_v50, 16  ;;  %v486_v16 = vshll.u32 %v388_v50, 16  ;;  %v475_v19 = vrot.slane %v473_v8, 7 }
  0x37   :  { %811 = vmatmul.msk.bf16.vlgmr.msrb.gmra.mxu2 %vm242_vm3, %v514_v60  ;;  %552 = vst [vmem:[#allocation1] ss:$4 sm:$0xff] %v404_v22  ;;  %v463_v17 = vor.u32 %v462_v1, %v459_v46  ;;  %v492_v20 = vshll.u32 %v391_v55, 16  ;;  %v609_v21 = vrot.slane %v1118_v36, 2  ;;  %v481_v26 = vrot.slane %v479_v13, 7 }
  0x38   :  { %555 = vst [vmem:[#allocation1 + $0x1] ss:$4 sm:$0xff] %v417_v43  ;;  %v451_v25 = vrot.slane %v450_v12, 2  ;;  %v485_v22 = vrot.slane %v483_v15, 6  ;;  %v488_v48 = vrot.slane %v486_v16, 7  ;;  %v476_v54 = vor.u32 %v475_v19, %v472_v7 }
  0x39   :  { %558 = vst [vmem:[#allocation1 + $0x2] ss:$4 sm:$0xff] %v430_v29  ;;  %v464_v28 = vrot.slane %v463_v17, 2  ;;  %v494_v32 = vrot.slane %v492_v20, 7  ;;  %v618_v43 = vsel %vm56_vm1, %v1118_v36, %v609_v21  ;;  %v619_v58 = vsel %vm60_vm2, %v1118_v36, %v609_v21 }
  0x3a   :  { %561 = vst [vmem:[#allocation1 + $0x3] ss:$4 sm:$0xff] %v443_v62  ;;  %v456_v33 = vsel %vm939_vm10, %v451_v25, %v455_v0  ;;  %v489_v29 = vor.u32 %v488_v48, %v485_v22  ;;  %v635_v34 = vshrl.u32 %v618_v43, 16  ;;  %v477_v39 = vrot.slane %v476_v54, 2 }
  0x3b   :  { %v469_v38 = vsel %vm939_vm10, %v464_v28, %v468_v5  ;;  %564 = vst [vmem:[#allocation1 + $0x20] ss:$4 sm:$0xff] %v456_v33  ;;  %v621_v18 = vrot.slane %v619_v58, 2  ;;  %v638_v40 = vshll.u32 %v618_v43, 16  ;;  %v615_v52 = vrot.slane %v1103_v37, 2 }
  0x3c   :  { %v490_v41 = vrot.slane %v489_v29, 2  ;;  %567 = vst [vmem:[#allocation1 + $0x21] ss:$4 sm:$0xff] %v469_v38  ;;  %v637_v42 = vrot.slane %v635_v34, 6  ;;  %v482_v47 = vsel %vm939_vm10, %v477_v39, %v481_v26  ;;  %v624_v30 = vrot.slane %v622_v44, 6 }
  0x3d   :  { %v640_v50 = vrot.slane %v638_v40, 7  ;;  %v644_v51 = vshll.u32 %v621_v18, 16  ;;  %v627_v53 = vrot.slane %v625_v45, 7  ;;  %570 = vst [vmem:[#allocation1 + $0x22] ss:$4 sm:$0xff] %v482_v47  ;;  %v631_v44 = vshll.u32 %v615_v52, 16 }
  0x3e   :  { %v495_v55 = vsel %vm939_vm10, %v490_v41, %v494_v32  ;;  %vm784_vm13 = vcmask 123904  }
  0x3f   :  { %573 = vst [vmem:[#allocation1 + $0x23] ss:$4 sm:$0xff] %v495_v55  ;;  %v641_v57 = vor.u32 %v640_v50, %v637_v42  ;;  %v646_v59 = vrot.slane %v644_v51, 7  ;;  %v628_v37 = vor.u32 %v627_v53, %v624_v30  ;;  %v633_v0 = vrot.slane %v631_v44, 7 }
  0x41   :  { %v574_v56 = vld.sshfl [vmem:[#allocation1] sm:$0xff pattern:$0x73625140]  ;;  %v642_v60 = vrot.slane %v641_v57, 2  ;;  %v629_v63 = vrot.slane %v628_v37, 2 }
  0x42   :  { %814 = vmatmul.msk.bf16.vlgmr.msrb.gmra.mxu3 %vm296_vm11, %v574_v56  ;;  %651 = vst [vmem:[#allocation1] ss:$4 sm:$0xff] %v914_v24 }
  0x43   :  { %653 = vst [vmem:[#allocation1 + $0x1] ss:$4 sm:$0xff] %v920_v27  ;;  %v647_v45 = vsel %vm939_vm10, %v642_v60, %v646_v59  ;;  %v634_v27 = vsel %vm939_vm10, %v629_v63, %v633_v0 }
  0x44   :  { %655 = vst [vmem:[#allocation1 + $0x2] ss:$4 sm:$0xff] %v926_v35 }
  0x45   :  { %657 = vst [vmem:[#allocation1 + $0x3] ss:$4 sm:$0xff] %v1073_v61 }
  0x46   :  { %v575_v62 = vld.sshfl [vmem:[#allocation1 + $0x20] sm:$0xff pattern:$0x73625140] }
  0x47   :  { %812 = vmatmul.msk.bf16.gmra.mxu2 %vm242_vm3, %v515_v11  ;;  %659 = vst [vmem:[#allocation1 + $0x20] ss:$4 sm:$0xff] %v867_v2 }
  0x48   :  { %661 = vst [vmem:[#allocation1 + $0x21] ss:$4 sm:$0xff] %v872_v3 }
  0x49   :  { %663 = vst [vmem:[#allocation1 + $0x22] ss:$4 sm:$0xff] %v877_v4 }
  0x4a   :  { %665 = vst [vmem:[#allocation1 + $0x23] ss:$4 sm:$0xff] %v1118_v36 }
  0x4c   :  { %v666_v24 = vld.sshfl [vmem:[#allocation1] sm:$0xff pattern:$0x73625140] }
  0x4d   :  { %822 = vmatmul.msk.bf16.vlgmr.msrb.gmra.mxu0 %vm242_vm3, %v666_v24  ;;  %703 = vst [vmem:[#allocation1] ss:$4 sm:$0xff] %v1016_v9 }
  0x4e   :  { %705 = vst [vmem:[#allocation1 + $0x1] ss:$4 sm:$0xff] %v1023_v14 }
  0x4f   :  { %707 = vst [vmem:[#allocation1 + $0x2] ss:$4 sm:$0xff] %v1054_v31 }
  0x50   :  { %710 = vst [vmem:[#allocation1 + $0x3] ss:$4 sm:$0xff] %v634_v27 }
  0x51   :  { %v667_v2 = vld.sshfl [vmem:[#allocation1 + $0x20] sm:$0xff pattern:$0x73625140] }
  0x52   :  { %815 = vmatmul.msk.bf16.gmra.mxu3 %vm296_vm11, %v575_v62  ;;  %712 = vst [vmem:[#allocation1 + $0x20] ss:$4 sm:$0xff] %v954_v6 }
  0x53   :  { %714 = vst [vmem:[#allocation1 + $0x21] ss:$4 sm:$0xff] %v961_v10  ;;  %v832_v10 = vld [vmem:[%s1200_s3] ss:$0 sm:$0xff] }
  0x54   :  { %716 = vst [vmem:[#allocation1 + $0x22] ss:$4 sm:$0xff] %v982_v23 }
  0x55   :  { %719 = vst [vmem:[#allocation1 + $0x23] ss:$4 sm:$0xff] %v647_v45 }
  0x57   :  { %v720_v3 = vld.sshfl [vmem:[#allocation1] sm:$0xff pattern:$0x73625140] }
  0x58   :  { %825 = vmatmul.msk.bf16.vlgmr.msrb.gmra.mxu1 %vm296_vm11, %v720_v3 }
  0x5c   :  { %v721_v4 = vld.sshfl [vmem:[#allocation1 + $0x20] sm:$0xff pattern:$0x73625140] }
  0x5d   :  { %823 = vmatmul.msk.bf16.gmra.mxu0 %vm242_vm3, %v667_v2 }
  0x68   :  { %826 = vmatmul.msk.bf16.gmra.mxu1 %vm296_vm11, %v721_v4 }
  0x90   :  { %v261_v35 = vpop.f32.mrf.mxu2 }
  0x91   :  { %v268_v26 = vadd.f32 %v832_v10, %v261_v35 }
  0x92   :  { %v256_v9 = vpop.f32.mrf.mxu0 }
  0x93   :  { %v266_v36 = vadd.f32 %v832_v10, %v256_v9 }
  0x98   :  { %v263_v14 = vpop.f32.mrf.mxu2 }
  0x99   :  { %v269_v47 = vadd.f32 %v832_v10, %v263_v14 }
  0x9a   :  { %v258_v6 = vpop.f32.mrf.mxu0 }
  0x9b   :  { %v267_v12 = vadd.f32 %v832_v10, %v258_v6 }
  0xa2   :  { %v319_v49 = vpop.f32.mrf.mxu3 }
  0xa3   :  { %v326_v29 = vadd.f32 %v319_v49, %v268_v26 }
  0xa9   :  { %v314_v61 = vpop.f32.mrf.mxu1 }
  0xaa   :  { %v321_v31 = vpop.f32.mrf.mxu3  ;;  %v324_v1 = vadd.f32 %v314_v61, %v266_v36 }
  0xab   :  { %v327_v53 = vadd.f32 %v321_v31, %v269_v47 }
  0xb1   :  { %v316_v7 = vpop.f32.mrf.mxu1 }
  0xb2   :  { %v325_v16 = vadd.f32 %v316_v7, %v267_v12 }
  0xba   :  { %v535_v23 = vpop.f32.mrf.mxu2 }
  0xbb   :  { %v545_v8 = vadd.f32 %v535_v23, %v324_v1 }
  0xc2   :  { %v537_v11 = vpop.f32.mrf.mxu2 }
  0xc3   :  { %v546_v21 = vadd.f32 %v537_v11, %v325_v16 }
  0xc5   :  { %v592_v46 = vpop.f32.mrf.mxu3 }
  0xc6   :  { %v602_v13 = vadd.f32 %v592_v46, %v545_v8 }
  0xca   :  { %v687_v5 = vpop.f32.mrf.mxu0  ;;  %v540_v28 = vpop.f32.mrf.mxu2 }
  0xcb   :  { %v697_v17 = vadd.f32 %v687_v5, %v602_v13  ;;  %v547_v39 = vadd.f32 %v540_v28, %v326_v29 }
  0xcd   :  { %v594_v15 = vpop.f32.mrf.mxu3 }
  0xce   :  { %v603_v22 = vadd.f32 %v594_v15, %v546_v21 }
  0xd2   :  { %v689_v19 = vpop.f32.mrf.mxu0  ;;  %v542_v51 = vpop.f32.mrf.mxu2 }
  0xd3   :  { %v698_v58 = vadd.f32 %v689_v19, %v603_v22  ;;  %v548_v60 = vadd.f32 %v542_v51, %v327_v53 }
  0xd5   :  { %v738_v20 = vpop.f32.mrf.mxu1  ;;  %v597_v33 = vpop.f32.mrf.mxu3 }
  0xd6   :  { %v748_v25 = vadd.f32 %v738_v20, %v697_v17  ;;  %v604_v41 = vadd.f32 %v597_v33, %v547_v39 }
  0xd8   :  { %vm752_vm12 = vcmp.ge.f32.partialorder %v748_v25, 0.0  ;;  %v756_v48 = vmul.f32 0.01, %v748_v25 }
  0xda   :  { %v760_v54 = vsel %vm752_vm12, %v748_v25, %v756_v48  ;;  %v692_v40 = vpop.f32.mrf.mxu0 }
  0xdb   :  { %v768_v32 = vrot.slane %v760_v54, 4  ;;  %v776_v43 = vpack.c.bf16 %v760_v54, %v760_v54  ;;  %v699_v55 = vadd.f32 %v692_v40, %v604_v41 }
  0xdd   :  { %v777_v34 = vpack.c.bf16 %v768_v32, %v768_v32  ;;  %785 = vst.msk [vmem:[%s1201_s4] sm:$0x3] %vm784_vm13, %v776_v43  ;;  %v740_v38 = vpop.f32.mrf.mxu1  ;;  %v599_v57 = vpop.f32.mrf.mxu3 }
  0xde   :  { %v749_v18 = vadd.f32 %v740_v38, %v698_v58  ;;  %v605_v44 = vadd.f32 %v599_v57, %v548_v60 }
  0xdf   :  { %786 = vst.msk [vmem:[%s1201_s4 + $0x2] sm:$0x3] %vm784_vm13, %v777_v34 }
  0xe0   :  { %vm753_vm14 = vcmp.ge.f32.partialorder %v749_v18, 0.0  ;;  %v757_v42 = vmul.f32 0.01, %v749_v18 }
  0xe2   :  { %v761_v50 = vsel %vm753_vm14, %v749_v18, %v757_v42  ;;  %v694_v62 = vpop.f32.mrf.mxu0 }
  0xe3   :  { %v769_v52 = vrot.slane %v761_v50, 4  ;;  %v778_v30 = vpack.c.bf16 %v761_v50, %v761_v50  ;;  %v700_v27 = vadd.f32 %v694_v62, %v605_v44 }
  0xe5   :  { %v779_v56 = vpack.c.bf16 %v769_v52, %v769_v52  ;;  %787 = vst.msk [vmem:[%s1201_s4 + $0x4] sm:$0x3] %vm784_vm13, %v778_v30  ;;  %v743_v59 = vpop.f32.mrf.mxu1 }
  0xe6   :  { %v750_v37 = vadd.f32 %v743_v59, %v699_v55 }
  0xe7   :  { %788 = vst.msk [vmem:[%s1201_s4 + $0x6] sm:$0x3] %vm784_vm13, %v779_v56 }
  0xe8   :  { %vm754_vm15 = vcmp.ge.f32.partialorder %v750_v37, 0.0  ;;  %v758_v45 = vmul.f32 0.01, %v750_v37 }
  0xea   :  { %v762_v63 = vsel %vm754_vm15, %v750_v37, %v758_v45 }
  0xeb   :  { %v770_v0 = vrot.slane %v762_v63, 4  ;;  %v780_v24 = vpack.c.bf16 %v762_v63, %v762_v63 }
  0xed   :  { %v781_v2 = vpack.c.bf16 %v770_v0, %v770_v0  ;;  %789 = vst.msk [vmem:[%s1201_s4 + $0x8] sm:$0x3] %vm784_vm13, %v780_v24  ;;  %v745_v3 = vpop.f32.mrf.mxu1 }
  0xee   :  { %v751_v4 = vadd.f32 %v745_v3, %v700_v27 }
  0xef   :  { %790 = vst.msk [vmem:[%s1201_s4 + $0xa] sm:$0x3] %vm784_vm13, %v781_v2 }
  0xf0   :  { %vm755_vm0 = vcmp.ge.f32.partialorder %v751_v4, 0.0  ;;  %v759_v35 = vmul.f32 0.01, %v751_v4 }
  0xf2   :  { %v763_v49 = vsel %vm755_vm0, %v751_v4, %v759_v35 }
  0xf3   :  { %v771_v9 = vrot.slane %v763_v49, 4  ;;  %v782_v14 = vpack.c.bf16 %v763_v49, %v763_v49 }
  0xf5   :  { %v783_v31 = vpack.c.bf16 %v771_v9, %v771_v9  ;;  %791 = vst.msk [vmem:[%s1201_s4 + $0xc] sm:$0x3] %vm784_vm13, %v782_v14 }
  0xf7   :  { %792 = vst.msk [vmem:[%s1201_s4 + $0xe] sm:$0x3] %vm784_vm13, %v783_v31 }

// kernel: a_call__.3
= control target key start
LH: loop header
LB: loop body
LE: loop exit
PB: predicated region body
PF: predicated region fallthrough
CT: control target
= control target key end

     0   :  { %vm383_vm0 = vcmask 1043456   ;;  %vm358_vm1 = vcmask 64512   ;;  %vm502_vm2 = vcmask 1041408   ;;  %vm90_vm3 = vsmask.f32 3328  ;;  %s2982_s1 = inlined_call_operand.vmem [shape: bf16[3,8,8], index: 1, kind: input, shape index: {}]   ;;  %s2983_s0 = inlined_call_operand.vmem [shape: bf16[2,9,2,9,8], index: 0, kind: input, shape index: {}]   ;;  %s2984_s2 = inlined_call_operand.vmem [shape: bf16[3,4,8], index: 2, kind: input, shape index: {}]   ;;  %s2985_s3 = inlined_call_operand.vmem [shape: f32[1,8], index: 3, kind: input, shape index: {}]   ;;  %s2986_s4 = inlined_call_operand.vmem [shape: bf16[2,10,10,8], index: 4, kind: output, shape index: {}]  }
   0x1   :  { %v317_v0 = vld [vmem:[%s2982_s1] sm:$0xf]  ;;  %v52_v1 = vld [vmem:[%s2983_s0 + $0x90] sm:$0xf]  ;;  %v1674_v12 = vld [vmem:[%s2982_s1 + $0x4] sm:$0xf] }
   0x2   :  { %v1853_v2 = vld [vmem:[%s2983_s0 + $0xa0] sm:$0xf]  ;;  %v385_v3 = vsel %vm383_vm0, %v317_v0, 0  ;;  %v206_v4 = vshrl.u32 %v52_v1, 16  ;;  %v209_v5 = vshll.u32 %v52_v1, 16  ;;  %v342_v9 = vunpack.c.l.b16 %v52_v1 }
   0x3   :  { %v220_v6 = vshrl.u32 %v1853_v2, 16  ;;  %v452_v7 = vld [vmem:[%s2984_s2] sm:$0x3]  ;;  %1814 = vmatpush.bf16.msra.mxu2 %v385_v3  ;;  %v223_v8 = vshll.u32 %v1853_v2, 16  ;;  %v343_v10 = vunpack.c.l.b16 %v1853_v2  ;;  %394 = vmatpush.bf16.msra.mxu0 %v385_v3  ;;  %v862_v17 = vsel %vm383_vm0, %v1674_v12, 0 }
   0x4   :  { %v504_v11 = vsel %vm502_vm2, %v452_v7, 0  ;;  %v18_v13 = vld [vmem:[%s2983_s0] sm:$0xf]  ;;  %v208_v14 = vrot.slane %v206_v4, 4  ;;  %v211_v15 = vrot.slane %v209_v5, 5  ;;  %vm477_vm6 = vcmask 31744  }
   0x5   :  { %v222_v16 = vrot.slane %v220_v6, 4  ;;  %1815 = vmatpush.bf16.msra.mxu3 %v504_v11  ;;  %513 = vmatpush.bf16.msra.mxu1 %v504_v11  ;;  %v1873_v18 = vld [vmem:[%s2983_s0 + $0x10] sm:$0xf]  ;;  %v225_v19 = vrot.slane %v223_v8, 5  ;;  %v354_v20 = vpack.c.b16 %v343_v10, %v342_v9  ;;  %v94_v21 = vshrl.u32 %v18_v13, 16 }
   0x6   :  { %v97_v22 = vshll.u32 %v18_v13, 16  ;;  %v53_v23 = vld [vmem:[%s2983_s0 + $0x94] sm:$0x1]  ;;  %v108_v24 = vshrl.u32 %v1873_v18, 16  ;;  %v111_v25 = vshll.u32 %v1873_v18, 16  ;;  %v334_v26 = vunpack.c.l.b16 %v18_v13 }
   0x7   :  { %871 = vmatpush.bf16.msrb.mxu2 %v862_v17  ;;  %v335_v27 = vunpack.c.l.b16 %v1873_v18  ;;  %v57_v28 = vld [vmem:[%s2983_s0 + $0xa4] sm:$0x1]  ;;  %v1715_v29 = vld [vmem:[%s2984_s2 + $0x2] sm:$0x3]  ;;  %v96_v30 = vrot.slane %v94_v21, 4  ;;  %v212_v32 = vor.u32 %v211_v15, %v208_v14  ;;  %v215_v37 = vshll.u32 %v53_v23, 16 }
   0x8   :  { %1662 = vmatmul.msk.bf16.vlgmr.msra.gmra.mxu2 %vm358_vm1, %v354_v20  ;;  %v99_v31 = vrot.slane %v97_v22, 5  ;;  %vm91_vm4 = vsmask.f32 7440  ;;  %v19_v33 = vld [vmem:[%s2983_s0 + $0x4] sm:$0x1]  ;;  %v110_v34 = vrot.slane %v108_v24, 4  ;;  %v226_v41 = vor.u32 %v225_v19, %v222_v16 }
   0x9   :  { %v113_v35 = vrot.slane %v111_v25, 5  ;;  %v350_v36 = vpack.c.b16 %v335_v27, %v334_v26  ;;  %v23_v38 = vld [vmem:[%s2983_s0 + $0x14] sm:$0x1]  ;;  %vm1899_vm5 = vmor %vm90_vm3, %vm91_vm4  ;;  %v213_v40 = vrot.slane %v212_v32, 4  ;;  %v229_v42 = vshll.u32 %v57_v28, 16 }
   0xa   :  { %v1906_v43 = vld [vmem:[%s2983_s0 + $0xb0] sm:$0xf]  ;;  %v217_v44 = vrot.slane %v215_v37, 5  ;;  %v980_v45 = vsel %vm502_vm2, %v1715_v29, 0  ;;  %v100_v46 = vor.u32 %v99_v31, %v96_v30  ;;  %v103_v47 = vshll.u32 %v19_v33, 16 }
   0xb   :  { %1658 = vmatmul.msk.bf16.vlgmr.msra.gmra.mxu0 %vm358_vm1, %v350_v36  ;;  %v227_v48 = vrot.slane %v226_v41, 4  ;;  %v231_v49 = vrot.slane %v229_v42, 5  ;;  %989 = vmatpush.bf16.msrb.mxu3 %v980_v45  ;;  %v114_v50 = vor.u32 %v113_v35, %v110_v34  ;;  %v117_v51 = vshll.u32 %v23_v38, 16  ;;  %v1915_v55 = vld [vmem:[%s2983_s0 + $0xc0] sm:$0xf] }
   0xc   :  { %v218_v52 = vsel %vm1899_vm5, %v213_v40, %v217_v44  ;;  %v101_v53 = vrot.slane %v100_v46, 4  ;;  %v105_v54 = vrot.slane %v103_v47, 5  ;;  %v234_v56 = vshrl.u32 %v1906_v43, 16  ;;  %v1724_v1 = vld [vmem:[%s2982_s1 + $0x8] sm:$0xf] }
   0xd   :  { %v232_v57 = vsel %vm1899_vm5, %v227_v48, %v231_v49  ;;  %v461_v58 = vunpack.c.l.b16 %v218_v52  ;;  %v115_v59 = vrot.slane %v114_v50, 4  ;;  %v119_v60 = vrot.slane %v117_v51, 5  ;;  %v1733_v7 = vld [vmem:[%s2984_s2 + $0x4] sm:$0x3]  ;;  %v1938_v8 = vld [vmem:[%s2983_s0 + $0x20] sm:$0xf] }
   0xe   :  { %v1920_v61 = vunpack.c.l.b16 %v232_v57  ;;  %v106_v62 = vsel %vm1899_vm5, %v101_v53, %v105_v54  ;;  %v236_v63 = vrot.slane %v234_v56, 4  ;;  %v237_v0 = vshll.u32 %v1906_v43, 16  ;;  %v1947_v14 = vld [vmem:[%s2983_s0 + $0x30] sm:$0xf]  ;;  %v61_v24 = vld [vmem:[%s2983_s0 + $0xb4] sm:$0x1] }
   0xf   :  { %v120_v3 = vsel %vm1899_vm5, %v115_v59, %v119_v60  ;;  %v453_v4 = vunpack.c.l.b16 %v106_v62  ;;  %v248_v5 = vshrl.u32 %v1915_v55, 16  ;;  %v251_v6 = vshll.u32 %v1915_v55, 16  ;;  %v65_v30 = vld [vmem:[%s2983_s0 + $0xc4] sm:$0x1]  ;;  %v31_v36 = vld [vmem:[%s2983_s0 + $0x34] sm:$0x1] }
  0x10   :  { %v473_v9 = vpack.c.b16 %v1920_v61, %v461_v58  ;;  %v1941_v11 = vunpack.c.l.b16 %v120_v3  ;;  %v239_v12 = vrot.slane %v237_v0, 5  ;;  %v344_v13 = vunpack.c.l.b16 %v1906_v43  ;;  %v27_v35 = vld [vmem:[%s2983_s0 + $0x24] sm:$0x1]  ;;  %v1980_v42 = vld [vmem:[%s2983_s0 + $0xd0] sm:$0xf] }
  0x11   :  { %v250_v15 = vrot.slane %v248_v5, 4  ;;  %v253_v16 = vrot.slane %v251_v6, 5  ;;  %v345_v17 = vunpack.c.l.b16 %v1915_v55  ;;  %v1114_v19 = vsel %vm383_vm0, %v1724_v1, 0  ;;  %v1990_v56 = vld [vmem:[%s2983_s0 + $0xe0] sm:$0xf] }
  0x12   :  { %1670 = vmatmul.msk.bf16.vlgmr.msra.gmra.mxu3 %vm477_vm6, %v473_v9  ;;  %v469_v20 = vpack.c.b16 %v1941_v11, %v453_v4  ;;  %1123 = vmatpush.bf16.msrb.mxu0 %v1114_v19  ;;  %v1218_v21 = vsel %vm502_vm2, %v1733_v7, 0  ;;  %v122_v22 = vshrl.u32 %v1938_v8, 16  ;;  %v125_v23 = vshll.u32 %v1938_v8, 16  ;;  %v2004_v4 = vld [vmem:[%s2983_s0 + $0x40] sm:$0xf] }
  0x13   :  { %v355_v25 = vpack.c.b16 %v345_v17, %v344_v13  ;;  %1227 = vmatpush.bf16.msrb.mxu1 %v1218_v21  ;;  %v136_v26 = vshrl.u32 %v1947_v14, 16  ;;  %v139_v28 = vshll.u32 %v1947_v14, 16  ;;  %v336_v29 = vunpack.c.l.b16 %v1938_v8 }
  0x14   :  { %1666 = vmatmul.msk.bf16.vlgmr.msra.gmra.mxu1 %vm477_vm6, %v469_v20  ;;  %v124_v31 = vrot.slane %v122_v22, 4  ;;  %v127_v32 = vrot.slane %v125_v23, 5  ;;  %v337_v33 = vunpack.c.l.b16 %v1947_v14  ;;  %v240_v34 = vor.u32 %v239_v12, %v236_v63  ;;  %v2014_v12 = vld [vmem:[%s2983_s0 + $0x50] sm:$0xf]  ;;  %v37_v14 = vld [vmem:[%s2983_s0 + $0x4c] sm:$0x1] }
  0x15   :  { %v138_v37 = vrot.slane %v136_v26, 4  ;;  %v141_v38 = vrot.slane %v139_v28, 5  ;;  %v243_v40 = vshll.u32 %v61_v24, 16  ;;  %v254_v41 = vor.u32 %v253_v16, %v250_v15 }
  0x16   :  { %v351_v44 = vpack.c.b16 %v337_v33, %v336_v29  ;;  %v241_v45 = vrot.slane %v240_v34, 4  ;;  %v257_v46 = vshll.u32 %v65_v30, 16  ;;  %v128_v47 = vor.u32 %v127_v32, %v124_v31  ;;  %v69_v31 = vld [vmem:[%s2983_s0 + $0xd4] sm:$0x1] }
  0x17   :  { %v245_v48 = vrot.slane %v243_v40, 5  ;;  %v255_v49 = vrot.slane %v254_v41, 4  ;;  %v131_v50 = vshll.u32 %v27_v35, 16  ;;  %v142_v51 = vor.u32 %v141_v38, %v138_v37  ;;  %v35_v37 = vld [vmem:[%s2983_s0 + $0x44] sm:$0x1] }
  0x18   :  { %1663 = vmatmul.msk.bf16.gmra.mxu2 %vm358_vm1, %v355_v25  ;;  %v259_v52 = vrot.slane %v257_v46, 5  ;;  %v129_v53 = vrot.slane %v128_v47, 4  ;;  %v145_v54 = vshll.u32 %v31_v36, 16  ;;  %v262_v57 = vshrl.u32 %v1980_v42, 16  ;;  %v73_v36 = vld [vmem:[%s2983_s0 + $0xe4] sm:$0x1] }
  0x19   :  { %v246_v58 = vsel %vm1899_vm5, %v241_v45, %v245_v48  ;;  %v133_v59 = vrot.slane %v131_v50, 5  ;;  %v143_v60 = vrot.slane %v142_v51, 4  ;;  %v265_v62 = vshll.u32 %v1980_v42, 16 }
  0x1a   :  { %v260_v63 = vsel %vm1899_vm5, %v255_v49, %v259_v52  ;;  %v1999_v0 = vunpack.c.l.b16 %v246_v58  ;;  %v147_v1 = vrot.slane %v145_v54, 5  ;;  %v264_v3 = vrot.slane %v262_v57, 4  ;;  %v39_v49 = vld [vmem:[%s2983_s0 + $0x54] sm:$0x1] }
  0x1b   :  { %1659 = vmatmul.msk.bf16.gmra.mxu0 %vm358_vm1, %v351_v44  ;;  %v2006_v5 = vunpack.c.l.b16 %v260_v63  ;;  %v134_v6 = vsel %vm1899_vm5, %v129_v53, %v133_v59  ;;  %v267_v7 = vrot.slane %v265_v62, 5  ;;  %v276_v9 = vshrl.u32 %v1990_v56, 16 }
  0x1c   :  { %v148_v15 = vsel %vm1899_vm5, %v143_v60, %v147_v1  ;;  %v2018_v16 = vunpack.c.l.b16 %v134_v6  ;;  %v279_v19 = vshll.u32 %v1990_v56, 16  ;;  %v346_v20 = vunpack.c.l.b16 %v1980_v42  ;;  %v2055_v60 = vld [vmem:[%s2983_s0 + $0xf0] sm:$0xf] }
  0x1d   :  { %v474_v21 = vpack.c.b16 %v2006_v5, %v1999_v0  ;;  %v2024_v22 = vunpack.c.l.b16 %v148_v15  ;;  %v278_v23 = vrot.slane %v276_v9, 4  ;;  %v347_v24 = vunpack.c.l.b16 %v1990_v56  ;;  %v2067_v15 = vld [vmem:[%s2983_s0 + $0x100] sm:$0xf] }
  0x1e   :  { %v281_v25 = vrot.slane %v279_v19, 5  ;;  %v150_v26 = vshrl.u32 %v2004_v4, 16  ;;  %v153_v28 = vshll.u32 %v2004_v4, 16  ;;  %v164_v30 = vshrl.u32 %v2014_v12, 16 }
  0x1f   :  { %v470_v32 = vpack.c.b16 %v2024_v22, %v2018_v16  ;;  %v167_v34 = vshll.u32 %v2014_v12, 16  ;;  %v338_v35 = vunpack.c.l.b16 %v2004_v4  ;;  %v339_v44 = vunpack.c.l.b16 %v2014_v12  ;;  %v45_v12 = vld [vmem:[%s2983_s0 + $0x6c] sm:$0x1] }
  0x20   :  { %v152_v38 = vrot.slane %v150_v26, 4  ;;  %v155_v40 = vrot.slane %v153_v28, 5  ;;  %v166_v41 = vrot.slane %v164_v30, 4  ;;  %v268_v46 = vor.u32 %v267_v7, %v264_v3  ;;  %v2076_v26 = vld [vmem:[%s2983_s0 + $0x60] sm:$0xf] }
  0x21   :  { %v169_v45 = vrot.slane %v167_v34, 5  ;;  %v271_v47 = vshll.u32 %v69_v31, 16  ;;  %v282_v48 = vor.u32 %v281_v25, %v278_v23  ;;  %v356_v50 = vpack.c.b16 %v347_v24, %v346_v20  ;;  %v2082_v28 = vld [vmem:[%s2983_s0 + $0x70] sm:$0xf] }
  0x22   :  { %1671 = vmatmul.msk.bf16.gmra.mxu3 %vm477_vm6, %v474_v21  ;;  %v285_v51 = vshll.u32 %v73_v36, 16  ;;  %v156_v52 = vor.u32 %v155_v40, %v152_v38  ;;  %v159_v53 = vshll.u32 %v35_v37, 16  ;;  %v269_v54 = vrot.slane %v268_v46, 4 }
  0x23   :  { %v273_v57 = vrot.slane %v271_v47, 5  ;;  %v283_v58 = vrot.slane %v282_v48, 4  ;;  %v170_v59 = vor.u32 %v169_v45, %v166_v41  ;;  %v352_v62 = vpack.c.b16 %v339_v44, %v338_v35 }
  0x24   :  { %1667 = vmatmul.msk.bf16.gmra.mxu1 %vm477_vm6, %v470_v32  ;;  %v287_v63 = vrot.slane %v285_v51, 5  ;;  %v173_v1 = vshll.u32 %v39_v49, 16  ;;  %v157_v6 = vrot.slane %v156_v52, 4  ;;  %v161_v7 = vrot.slane %v159_v53, 5  ;;  %v81_v53 = vld [vmem:[%s2983_s0 + $0x104] sm:$0x1] }
  0x25   :  { %v274_v3 = vsel %vm1899_vm5, %v269_v54, %v273_v57  ;;  %v171_v9 = vrot.slane %v170_v59, 4  ;;  %v290_v23 = vshrl.u32 %v2055_v60, 16  ;;  %v293_v25 = vshll.u32 %v2055_v60, 16 }
  0x26   :  { %v288_v19 = vsel %vm1899_vm5, %v283_v58, %v287_v63  ;;  %v175_v21 = vrot.slane %v173_v1, 5  ;;  %v2084_v30 = vunpack.c.l.b16 %v274_v3  ;;  %v304_v31 = vshrl.u32 %v2067_v15, 16  ;;  %v43_v3 = vld [vmem:[%s2983_s0 + $0x64] sm:$0x1] }
  0x27   :  { %v307_v32 = vshll.u32 %v2067_v15, 16  ;;  %v2088_v34 = vunpack.c.l.b16 %v288_v19  ;;  %v162_v36 = vsel %vm1899_vm5, %v157_v6, %v161_v7  ;;  %v178_v38 = vshrl.u32 %v2076_v26, 16  ;;  %v47_v6 = vld [vmem:[%s2983_s0 + $0x74] sm:$0x1] }
  0x28   :  { %1664 = vmatmul.msk.bf16.gmra.mxu2 %vm358_vm1, %v356_v50  ;;  %v176_v37 = vsel %vm1899_vm5, %v171_v9, %v175_v21  ;;  %v292_v40 = vrot.slane %v290_v23, 4  ;;  %v295_v41 = vrot.slane %v293_v25, 5  ;;  %v181_v45 = vshll.u32 %v2076_v26, 16  ;;  %v77_v50 = vld [vmem:[%s2983_s0 + $0xf4] sm:$0x1] }
  0x29   :  { %v192_v46 = vshrl.u32 %v2082_v28, 16  ;;  %v306_v47 = vrot.slane %v304_v31, 4  ;;  %v309_v48 = vrot.slane %v307_v32, 5  ;;  %v195_v49 = vshll.u32 %v2082_v28, 16 }
  0x2a   :  { %v2102_v51 = vunpack.c.l.b16 %v162_v36  ;;  %v2104_v52 = vunpack.c.l.b16 %v176_v37  ;;  %v180_v54 = vrot.slane %v178_v38, 4  ;;  %v183_v57 = vrot.slane %v181_v45, 5 }
  0x2b   :  { %1660 = vmatmul.msk.bf16.gmra.mxu0 %vm358_vm1, %v352_v62  ;;  %v194_v58 = vrot.slane %v192_v46, 4  ;;  %v197_v59 = vrot.slane %v195_v49, 5  ;;  %v475_v62 = vpack.c.b16 %v2088_v34, %v2084_v30  ;;  %v296_v63 = vor.u32 %v295_v41, %v292_v40  ;;  %v24_v49 = vld [vmem:[%s2983_s0 + $0x18] sm:$0xf] }
  0x2c   :  { %v299_v1 = vshll.u32 %v77_v50, 16  ;;  %v348_v7 = vunpack.c.l.b16 %v2055_v60  ;;  %v349_v9 = vunpack.c.l.b16 %v2067_v15  ;;  %v310_v19 = vor.u32 %v309_v48, %v306_v47  ;;  %v20_v48 = vld [vmem:[%s2983_s0 + $0x8] sm:$0xf] }
  0x2d   :  { %v313_v21 = vshll.u32 %v81_v53, 16  ;;  %v471_v23 = vpack.c.b16 %v2104_v52, %v2102_v51  ;;  %v184_v25 = vor.u32 %v183_v57, %v180_v54  ;;  %v187_v31 = vshll.u32 %v43_v3, 16 }
  0x2e   :  { %v198_v32 = vor.u32 %v197_v59, %v194_v58  ;;  %v201_v36 = vshll.u32 %v47_v6, 16  ;;  %v340_v37 = vunpack.c.l.b16 %v2076_v26  ;;  %v341_v38 = vunpack.c.l.b16 %v2082_v28  ;;  %v55_v28 = vld [vmem:[%s2983_s0 + $0x9c] sm:$0x1] }
  0x2f   :  { %v297_v40 = vrot.slane %v296_v63, 4  ;;  %v301_v41 = vrot.slane %v299_v1, 5  ;;  %v357_v45 = vpack.c.b16 %v349_v9, %v348_v7  ;;  %v311_v46 = vrot.slane %v310_v19, 4 }
  0x30   :  { %v315_v47 = vrot.slane %v313_v21, 5  ;;  %v185_v50 = vrot.slane %v184_v25, 4  ;;  %v189_v53 = vrot.slane %v187_v31, 5  ;;  %v199_v54 = vrot.slane %v198_v32, 4 }
  0x31   :  { %v203_v57 = vrot.slane %v201_v36, 5  ;;  %v353_v58 = vpack.c.b16 %v341_v38, %v340_v37  ;;  %v302_v59 = vsel %vm1899_vm5, %v297_v40, %v301_v41  ;;  %v575_v1 = vshll.u32 %v20_v48, 16 }
  0x32   :  { %1672 = vmatmul.msk.bf16.gmra.mxu3 %vm477_vm6, %v475_v62  ;;  %v572_v62 = vshrl.u32 %v20_v48, 16  ;;  %v316_v63 = vsel %vm1899_vm5, %v311_v46, %v315_v47  ;;  %v586_v3 = vshrl.u32 %v24_v49, 16  ;;  %v589_v6 = vshll.u32 %v24_v49, 16  ;;  %v21_v46 = vld [vmem:[%s2983_s0 + $0xc] sm:$0x1] }
  0x33   :  { %v190_v19 = vsel %vm1899_vm5, %v185_v50, %v189_v53  ;;  %v204_v21 = vsel %vm1899_vm5, %v199_v54, %v203_v57  ;;  %v2151_v25 = vunpack.c.l.b16 %v316_v63  ;;  %v577_v32 = vrot.slane %v575_v1, 5  ;;  %v25_v47 = vld [vmem:[%s2983_s0 + $0x1c] sm:$0x1]  ;;  %v1677_v49 = vld [vmem:[%s2983_s0 + $0x8] sm:$0xf] }
  0x34   :  { %1668 = vmatmul.msk.bf16.gmra.mxu1 %vm477_vm6, %v471_v23  ;;  %v2149_v23 = vunpack.c.l.b16 %v302_v59  ;;  %v574_v31 = vrot.slane %v572_v62, 4  ;;  %v588_v36 = vrot.slane %v586_v3, 4  ;;  %v591_v40 = vrot.slane %v589_v6, 5  ;;  %v1806_v50 = vld [vmem:[%s2983_s0 + $0x14] sm:$0xf0] }
  0x35   :  { %v2153_v41 = vunpack.c.l.b16 %v190_v19  ;;  %v581_v54 = vshll.u32 %v21_v46, 16  ;;  %v1678_v62 = vor.u32 %v1806_v50, %v1677_v49  ;;  %v28_v19 = vld [vmem:[%s2983_s0 + $0x28] sm:$0xf]  ;;  %vm1349_vm7 = vcmask 60416  }
  0x36   :  { %v476_v48 = vpack.c.b16 %v2151_v25, %v2149_v23  ;;  %v578_v53 = vor.u32 %v577_v32, %v574_v31  ;;  %v592_v57 = vor.u32 %v591_v40, %v588_v36  ;;  %v1081_v31 = vpack.c.b16 %v336_v29, %v335_v27  ;;  %v29_v29 = vld [vmem:[%s2983_s0 + $0x2c] sm:$0x1] }
  0x37   :  { %v583_v1 = vrot.slane %v581_v54, 5  ;;  %v600_v32 = vshrl.u32 %v28_v19, 16  ;;  %v603_v36 = vshll.u32 %v28_v19, 16  ;;  %v33_v54 = vld [vmem:[%s2983_s0 + $0x3c] sm:$0x1]  ;;  %vm1351_vm8 = vcmask 57344  }
  0x38   :  { %1665 = vmatmul.msk.bf16.gmra.mxu2 %vm358_vm1, %v357_v45  ;;  %v2155_v45 = vunpack.c.l.b16 %v204_v21  ;;  %v579_v63 = vrot.slane %v578_v53, 4  ;;  %v593_v3 = vrot.slane %v592_v57, 4  ;;  %v32_v21 = vld [vmem:[%s2983_s0 + $0x38] sm:$0xf]  ;;  %vm1553_vm10 = vsmask.f32 7938 }
  0x39   :  { %v602_v18 = vrot.slane %v600_v32, 4  ;;  %v605_v53 = vrot.slane %v603_v36, 5  ;;  %vm1559_vm11 = vsmask.f32 256  ;;  %vm2677_vm12 = vmand %vm1349_vm7, %vm1553_vm10 }
  0x3a   :  { %v472_v59 = vpack.c.b16 %v2155_v45, %v2153_v41  ;;  %v584_v40 = vsel %vm1899_vm5, %v579_v63, %v583_v1  ;;  %v609_v63 = vshll.u32 %v29_v29, 16  ;;  %vm2690_vm13 = vmand %vm1351_vm8, %vm1559_vm11 }
  0x3b   :  { %1661 = vmatmul.msk.bf16.gmra.mxu0 %vm358_vm1, %v353_v58  ;;  %v595_v58 = vshll.u32 %v25_v47, 16  ;;  %v614_v47 = vshrl.u32 %v32_v21, 16  ;;  %v931_v49 = vunpack.c.l.b16 %v584_v40 }
  0x3c   :  { %v611_v36 = vrot.slane %v609_v63, 5  ;;  %v1186_v63 = vpack.c.b16 %v2102_v51, %v2024_v22  ;;  %v48_v22 = vld [vmem:[%s2983_s0 + $0x78] sm:$0xf] }
  0x3d   :  { %v597_v6 = vrot.slane %v595_v58, 5  ;;  %v616_v8 = vrot.slane %v614_v47, 4  ;;  %v1681_v58 = vld [vmem:[%s2983_s0 + $0x28] sm:$0xf] }
  0x3f   :  { %v598_v46 = vsel %vm1899_vm5, %v593_v3, %v597_v6  ;;  %v623_v3 = vshll.u32 %v33_v54, 16  ;;  %v1185_v6 = vpack.c.b16 %v2018_v16, %v1941_v11 }
  0x40   :  { %v932_v50 = vunpack.c.l.b16 %v598_v46 }
  0x41   :  { %v625_v46 = vrot.slane %v623_v3, 5  ;;  %v1808_v3 = vld [vmem:[%s2983_s0 + $0x54] sm:$0xf0] }
  0x42   :  { %1673 = vmatmul.msk.bf16.gmra.mxu3 %vm477_vm6, %v476_v48  ;;  %v617_v48 = vshll.u32 %v32_v21, 16  ;;  %v947_v57 = vpack.c.b16 %v932_v50, %v931_v49  ;;  %v36_v21 = vld [vmem:[%s2983_s0 + $0x48] sm:$0xf]  ;;  %v1082_v49 = vpack.c.b16 %v338_v35, %v337_v33  ;;  %v41_v33 = vld [vmem:[%s2983_s0 + $0x5c] sm:$0x1]  ;;  %v637_v35 = vshll.u32 %v37_v14, 16 }
  0x43   :  { %v628_v47 = vshrl.u32 %v36_v21, 16 }
  0x44   :  { %1669 = vmatmul.msk.bf16.gmra.mxu1 %vm477_vm6, %v472_v59  ;;  %v619_v27 = vrot.slane %v617_v48, 5  ;;  %v1807_v59 = vld [vmem:[%s2983_s0 + $0x34] sm:$0xf0]  ;;  %v631_v48 = vshll.u32 %v36_v21, 16 }
  0x45   :  { %v1682_v19 = vor.u32 %v1807_v59, %v1681_v58  ;;  %v651_v59 = vshll.u32 %v41_v33, 16 }
  0x46   :  { %v620_v1 = vor.u32 %v619_v27, %v616_v8  ;;  %v633_v8 = vrot.slane %v631_v48, 5 }
  0x48   :  { %1707 = vmatmul.msk.bf16.vlgmr.msrb.gmra.mxu2 %vm358_vm1, %v1678_v62  ;;  %v606_v62 = vor.u32 %v605_v53, %v602_v18  ;;  %v621_v40 = vrot.slane %v620_v1, 4  ;;  %v630_v53 = vrot.slane %v628_v47, 4  ;;  %v1685_v1 = vld [vmem:[%s2983_s0 + $0x48] sm:$0xf] }
  0x4a   :  { %v607_v32 = vrot.slane %v606_v62, 4  ;;  %v626_v18 = vsel %vm1899_vm5, %v621_v40, %v625_v46  ;;  %v634_v4 = vor.u32 %v633_v8, %v630_v53  ;;  %v1083_v46 = vpack.c.b16 %v340_v37, %v339_v44 }
  0x4b   :  { %1725 = vmatmul.msk.bf16.vlgmr.msrb.gmra.mxu0 %vm358_vm1, %v1081_v31  ;;  %v40_v31 = vld [vmem:[%s2983_s0 + $0x58] sm:$0xf] }
  0x4c   :  { %v642_v11 = vshrl.u32 %v40_v31, 16  ;;  %v645_v16 = vshll.u32 %v40_v31, 16  ;;  %v612_v50 = vsel %vm1899_vm5, %v607_v32, %v611_v36  ;;  %v653_v31 = vrot.slane %v651_v59, 5  ;;  %v44_v36 = vld [vmem:[%s2983_s0 + $0x68] sm:$0xf] }
  0x4d   :  { %v933_v54 = vunpack.c.l.b16 %v612_v50  ;;  %v1686_v32 = vor.u32 %v1808_v3, %v1685_v1  ;;  %v656_v47 = vshrl.u32 %v44_v36, 16  ;;  %v659_v48 = vshll.u32 %v44_v36, 16  ;;  %v51_v59 = vld [vmem:[%s2983_s0 + $0x84] sm:$0x1]  ;;  %v1809_v1 = vld [vmem:[%s2983_s0 + $0x74] sm:$0xf0] }
  0x4e   :  { %v644_v27 = vrot.slane %v642_v11, 4  ;;  %v647_v29 = vrot.slane %v645_v16, 5  ;;  %v670_v11 = vshrl.u32 %v48_v22, 16  ;;  %v673_v16 = vshll.u32 %v48_v22, 16 }
  0x4f   :  { %v658_v44 = vrot.slane %v656_v47, 4  ;;  %v661_v26 = vrot.slane %v659_v48, 5 }
  0x50   :  { %v648_v58 = vor.u32 %v647_v29, %v644_v27  ;;  %v672_v37 = vrot.slane %v670_v11, 4  ;;  %v675_v27 = vrot.slane %v673_v16, 5  ;;  %v49_v29 = vld [vmem:[%s2983_s0 + $0x7c] sm:$0x1] }
  0x52   :  { %1716 = vmatmul.msk.bf16.vlgmr.msrb.gmra.mxu3 %vm477_vm6, %v947_v57  ;;  %v934_v57 = vunpack.c.l.b16 %v626_v18  ;;  %v649_v21 = vrot.slane %v648_v58, 4  ;;  %v679_v58 = vshll.u32 %v49_v29, 16 }
  0x54   :  { %1734 = vmatmul.msk.bf16.vlgmr.msrb.gmra.mxu1 %vm477_vm6, %v1185_v6  ;;  %v948_v62 = vpack.c.b16 %v934_v57, %v933_v54  ;;  %v635_v6 = vrot.slane %v634_v4, 4  ;;  %v654_v40 = vsel %vm1899_vm5, %v649_v21, %v653_v31  ;;  %v665_v54 = vshll.u32 %v45_v12, 16 }
  0x55   :  { %v936_v18 = vunpack.c.l.b16 %v654_v40  ;;  %v662_v4 = vor.u32 %v661_v26, %v658_v44 }
  0x56   :  { %v667_v3 = vrot.slane %v665_v54, 5  ;;  %v1693_v54 = vld [vmem:[%s2983_s0 + $0x98] sm:$0xf] }
  0x57   :  { %v663_v21 = vrot.slane %v662_v4, 4 }
  0x58   :  { %1708 = vmatmul.msk.bf16.gmra.mxu2 %vm358_vm1, %v1682_v19  ;;  %v639_v19 = vrot.slane %v637_v35, 5  ;;  %v676_v35 = vor.u32 %v675_v27, %v672_v37 }
  0x5a   :  { %v640_v51 = vsel %vm1899_vm5, %v635_v6, %v639_v19  ;;  %v1057_v19 = vshll.u32 %v51_v59, 16  ;;  %v677_v31 = vrot.slane %v676_v35, 4 }
  0x5b   :  { %1726 = vmatmul.msk.bf16.gmra.mxu0 %vm358_vm1, %v1082_v49  ;;  %v50_v49 = vld [vmem:[%s2983_s0 + $0x80] sm:$0xf]  ;;  %v935_v50 = vunpack.c.l.b16 %v640_v51 }
  0x5c   :  { %v1048_v53 = vshrl.u32 %v50_v49, 16  ;;  %v1051_v8 = vshll.u32 %v50_v49, 16  ;;  %v1079_v36 = vunpack.c.l.b16 %v50_v49  ;;  %v1059_v40 = vrot.slane %v1057_v19, 5  ;;  %v66_v19 = vld [vmem:[%s2983_s0 + $0xc8] sm:$0xf] }
  0x5d   :  { %v949_v33 = vpack.c.b16 %v936_v18, %v935_v50  ;;  %v729_v43 = vshll.u32 %v66_v19, 16 }
  0x5e   :  { %v1050_v57 = vrot.slane %v1048_v53, 4  ;;  %v1053_v14 = vrot.slane %v1051_v8, 5  ;;  %v1084_v48 = vpack.c.b16 %v1079_v36, %v341_v38  ;;  %v59_v38 = vld [vmem:[%s2983_s0 + $0xac] sm:$0x1] }
  0x5f   :  { %v707_v35 = vshll.u32 %v59_v38, 16 }
  0x60   :  { %v1054_v6 = vor.u32 %v1053_v14, %v1050_v57  ;;  %v1810_v57 = vld [vmem:[%s2983_s0 + $0xa4] sm:$0xf0] }
  0x61   :  { %v1694_v59 = vor.u32 %v1810_v57, %v1693_v54  ;;  %v70_v54 = vld [vmem:[%s2983_s0 + $0xd8] sm:$0xf]  ;;  %v74_v57 = vld [vmem:[%s2983_s0 + $0xe8] sm:$0xf] }
  0x62   :  { %1717 = vmatmul.msk.bf16.gmra.mxu3 %vm477_vm6, %v948_v62  ;;  %v1187_v62 = vpack.c.b16 %v2153_v41, %v2104_v52  ;;  %v54_v52 = vld [vmem:[%s2983_s0 + $0x98] sm:$0xf]  ;;  %v58_v41 = vld [vmem:[%s2983_s0 + $0xa8] sm:$0xf]  ;;  %v1055_v51 = vrot.slane %v1054_v6, 4 }
  0x63   :  { %v684_v11 = vshrl.u32 %v54_v52, 16  ;;  %v687_v16 = vshll.u32 %v54_v52, 16  ;;  %v698_v49 = vshrl.u32 %v58_v41, 16  ;;  %v701_v50 = vshll.u32 %v58_v41, 16  ;;  %v62_v6 = vld [vmem:[%s2983_s0 + $0xb8] sm:$0xf] }
  0x64   :  { %1735 = vmatmul.msk.bf16.gmra.mxu1 %vm477_vm6, %v1186_v63  ;;  %v1689_v63 = vld [vmem:[%s2983_s0 + $0x68] sm:$0xf]  ;;  %v1060_v18 = vsel %vm1899_vm5, %v1055_v51, %v1059_v40  ;;  %v726_v52 = vshrl.u32 %v66_v19, 16 }
  0x65   :  { %v1690_v22 = vor.u32 %v1809_v1, %v1689_v63  ;;  %v686_v12 = vrot.slane %v684_v11, 4  ;;  %v689_v44 = vrot.slane %v687_v16, 5  ;;  %v700_v26 = vrot.slane %v698_v49, 4  ;;  %v63_v11 = vld [vmem:[%s2983_s0 + $0xbc] sm:$0x1] }
  0x66   :  { %v703_v37 = vrot.slane %v701_v50, 5  ;;  %v1183_v27 = vunpack.c.l.b16 %v1060_v18  ;;  %v67_v16 = vld [vmem:[%s2983_s0 + $0xcc] sm:$0x1] }
  0x67   :  { %v690_v14 = vor.u32 %v689_v44, %v686_v12  ;;  %v721_v12 = vshll.u32 %v63_v11, 16  ;;  %v1190_v11 = vpack.c.b16 %v2084_v30, %v2006_v5  ;;  %v78_v5 = vld [vmem:[%s2983_s0 + $0xf8] sm:$0xf] }
  0x68   :  { %1709 = vmatmul.msk.bf16.gmra.mxu2 %vm358_vm1, %v1686_v32  ;;  %v681_v32 = vrot.slane %v679_v58, 5  ;;  %v704_v4 = vor.u32 %v703_v37, %v700_v26  ;;  %v1188_v58 = vpack.c.b16 %v1183_v27, %v2155_v45  ;;  %v1085_v45 = vpack.c.b16 %v344_v13, %v343_v10 }
  0x69   :  { %v735_v26 = vshll.u32 %v67_v16, 16  ;;  %v1189_v37 = vpack.c.b16 %v1999_v0, %v1920_v61  ;;  %v1701_v16 = vld [vmem:[%s2983_s0 + $0xd8] sm:$0xf] }
  0x6a   :  { %v682_v47 = vsel %vm1899_vm5, %v677_v31, %v681_v32  ;;  %v705_v1 = vrot.slane %v704_v4, 4  ;;  %v715_v31 = vshll.u32 %v62_v6, 16  ;;  %v2322_v32 = vld [vmem:[%s2985_s3] ss:$0 sm:$0xff] }
  0x6b   :  { %1727 = vmatmul.msk.bf16.gmra.mxu0 %vm358_vm1, %v1083_v46  ;;  %v668_v46 = vsel %vm1899_vm5, %v663_v21, %v667_v3  ;;  %v938_v8 = vunpack.c.l.b16 %v682_v47  ;;  %v709_v3 = vrot.slane %v707_v35, 5  ;;  %v712_v21 = vshrl.u32 %v62_v6, 16 }
  0x6c   :  { %v937_v53 = vunpack.c.l.b16 %v668_v46  ;;  %v717_v40 = vrot.slane %v715_v31, 5  ;;  %v728_v47 = vrot.slane %v726_v52, 4  ;;  %v737_v61 = vrot.slane %v735_v26, 5 }
  0x6d   :  { %v710_v2 = vsel %vm1899_vm5, %v705_v1, %v709_v3  ;;  %v714_v51 = vrot.slane %v712_v21, 4  ;;  %v740_v35 = vshrl.u32 %v70_v54, 16  ;;  %v1086_v1 = vpack.c.b16 %v346_v20, %v345_v17  ;;  %v71_v17 = vld [vmem:[%s2983_s0 + $0xdc] sm:$0x1]  ;;  %v75_v20 = vld [vmem:[%s2983_s0 + $0xec] sm:$0x1] }
  0x6e   :  { %v950_v29 = vpack.c.b16 %v938_v8, %v937_v53  ;;  %v940_v41 = vunpack.c.l.b16 %v710_v2  ;;  %v1697_v53 = vld [vmem:[%s2983_s0 + $0xb8] sm:$0xf]  ;;  %v1811_v8 = vld [vmem:[%s2983_s0 + $0xc4] sm:$0xf0] }
  0x6f   :  { %v718_v50 = vor.u32 %v717_v40, %v714_v51  ;;  %v1698_v38 = vor.u32 %v1811_v8, %v1697_v53  ;;  %v742_v21 = vrot.slane %v740_v35, 4  ;;  %v763_v40 = vshll.u32 %v75_v20, 16  ;;  %v84_v35 = vld [vmem:[%s2983_s0 + $0x110] sm:$0xf] }
  0x70   :  { %v1062_v56 = vshrl.u32 %v84_v35, 16 }
  0x72   :  { %1718 = vmatmul.msk.bf16.gmra.mxu3 %vm477_vm6, %v949_v33  ;;  %v693_v33 = vshll.u32 %v55_v28, 16 }
  0x74   :  { %1736 = vmatmul.msk.bf16.gmra.mxu1 %vm477_vm6, %v1187_v62  ;;  %v691_v62 = vrot.slane %v690_v14, 4  ;;  %v695_v63 = vrot.slane %v693_v33, 5  ;;  %v723_v33 = vrot.slane %v721_v12, 5 }
  0x78   :  { %1710 = vmatmul.msk.bf16.gmra.mxu2 %vm358_vm1, %v1690_v22  ;;  %v696_v22 = vsel %vm1899_vm5, %v691_v62, %v695_v63  ;;  %v757_v62 = vshll.u32 %v74_v57, 16 }
  0x79   :  { %v939_v13 = vunpack.c.l.b16 %v696_v22 }
  0x7a   :  { %v759_v2 = vrot.slane %v757_v62, 5 }
  0x7b   :  { %1728 = vmatmul.msk.bf16.gmra.mxu0 %vm358_vm1, %v1084_v48  ;;  %v731_v48 = vrot.slane %v729_v43, 5  ;;  %v951_v49 = vpack.c.b16 %v940_v41, %v939_v13  ;;  %v749_v41 = vshll.u32 %v71_v17, 16  ;;  %v1064_v17 = vrot.slane %v1062_v56, 4 }
  0x7d   :  { %v732_v44 = vor.u32 %v731_v48, %v728_v47  ;;  %v751_v8 = vrot.slane %v749_v41, 5 }
  0x7f   :  { %v733_v4 = vrot.slane %v732_v44, 4  ;;  %v765_v44 = vrot.slane %v763_v40, 5 }
  0x81   :  { %v738_v19 = vsel %vm1899_vm5, %v733_v4, %v737_v61  ;;  %v1087_v4 = vpack.c.b16 %v348_v7, %v347_v24 }
  0x82   :  { %1719 = vmatmul.msk.bf16.gmra.mxu3 %vm477_vm6, %v950_v29  ;;  %v719_v29 = vrot.slane %v718_v50, 4  ;;  %v942_v42 = vunpack.c.l.b16 %v738_v19 }
  0x84   :  { %1737 = vmatmul.msk.bf16.gmra.mxu1 %vm477_vm6, %v1188_v58  ;;  %v743_v58 = vshll.u32 %v70_v54, 16  ;;  %v724_v6 = vsel %vm1899_vm5, %v719_v29, %v723_v33 }
  0x85   :  { %v941_v52 = vunpack.c.l.b16 %v724_v6 }
  0x86   :  { %v745_v31 = vrot.slane %v743_v58, 5 }
  0x87   :  { %v952_v47 = vpack.c.b16 %v942_v42, %v941_v52 }
  0x88   :  { %1711 = vmatmul.msk.bf16.gmra.mxu2 %vm358_vm1, %v1694_v59  ;;  %v2324_v36 = vpop.f32.mrf.mxu0  ;;  %v754_v59 = vshrl.u32 %v74_v57, 16  ;;  %v746_v13 = vor.u32 %v745_v31, %v742_v21  ;;  %v768_v57 = vshrl.u32 %v78_v5, 16  ;;  %v1065_v21 = vshll.u32 %v84_v35, 16 }
  0x8a   :  { %v756_v22 = vrot.slane %v754_v59, 4  ;;  %v747_v53 = vrot.slane %v746_v13, 4  ;;  %v770_v6 = vrot.slane %v768_v57, 4  ;;  %v1067_v20 = vrot.slane %v1065_v21, 5 }
  0x8b   :  { %v416_v10 = vpop.f32.mrf.mxu2  ;;  %1729 = vmatmul.msk.bf16.gmra.mxu0 %vm358_vm1, %v1085_v45 }
  0x8c   :  { %v444_v46 = vadd.f32 %v2322_v32, %v416_v10  ;;  %v760_v51 = vor.u32 %v759_v2, %v756_v22  ;;  %v752_v29 = vsel %vm1899_vm5, %v747_v53, %v751_v8  ;;  %v79_v22 = vld [vmem:[%s2983_s0 + $0xfc] sm:$0x1]  ;;  %v83_v2 = vld [vmem:[%s2983_s0 + $0x10c] sm:$0x1]  ;;  %v1068_v8 = vor.u32 %v1067_v20, %v1064_v17 }
  0x8d   :  { %v943_v59 = vunpack.c.l.b16 %v752_v29  ;;  %v791_v41 = vshll.u32 %v83_v2, 16  ;;  %v436_v20 = vadd.f32 %v2322_v32, %v2324_v36 }
  0x8e   :  { %v761_v12 = vrot.slane %v760_v51, 4  ;;  %v85_v51 = vld [vmem:[%s2983_s0 + $0x114] sm:$0x1] }
  0x90   :  { %v2338_v18 = vpop.f32.mrf.mxu0  ;;  %v766_v54 = vsel %vm1899_vm5, %v761_v12, %v765_v44  ;;  %v1071_v12 = vshll.u32 %v85_v51, 16 }
  0x91   :  { %v2348_v27 = vpop.f32.mrf.mxu1  ;;  %v944_v62 = vunpack.c.l.b16 %v766_v54 }
  0x92   :  { %1720 = vmatmul.msk.bf16.gmra.mxu3 %vm477_vm6, %v951_v49  ;;  %v1812_v49 = vld [vmem:[%s2983_s0 + $0xe4] sm:$0xf0]  ;;  %v1073_v29 = vrot.slane %v1071_v12, 5 }
  0x93   :  { %v418_v28 = vpop.f32.mrf.mxu2  ;;  %v953_v52 = vpack.c.b16 %v944_v62, %v943_v59 }
  0x94   :  { %v445_v14 = vadd.f32 %v2322_v32, %v418_v28  ;;  %1738 = vmatmul.msk.bf16.gmra.mxu1 %vm477_vm6, %v1189_v37  ;;  %v1702_v37 = vor.u32 %v1812_v49, %v1701_v16  ;;  %v82_v28 = vld [vmem:[%s2983_s0 + $0x108] sm:$0xf] }
  0x95   :  { %v535_v0 = vpop.f32.mrf.mxu3  ;;  %v782_v61 = vshrl.u32 %v82_v28, 16  ;;  %v1813_v16 = vld [vmem:[%s2983_s0 + $0x104] sm:$0xf0] }
  0x96   :  { %v2359_v63 = vadd.f32 %v535_v0, %v444_v46  ;;  %v785_v0 = vshll.u32 %v82_v28, 16 }
  0x97   :  { %v784_v24 = vrot.slane %v782_v61, 4 }
  0x98   :  { %1712 = vmatmul.msk.bf16.gmra.mxu2 %vm358_vm1, %v1698_v38  ;;  %v2366_v3 = vpop.f32.mrf.mxu0  ;;  %v787_v7 = vrot.slane %v785_v0, 5 }
  0x99   :  { %v2372_v45 = vpop.f32.mrf.mxu1 }
  0x9a   :  { %v788_v13 = vor.u32 %v787_v7, %v784_v24  ;;  %v1818_v24 = vmov 0  }
  0x9b   :  { %v421_v55 = vpop.f32.mrf.mxu2  ;;  %1730 = vmatmul.msk.bf16.gmra.mxu0 %vm358_vm1, %v1086_v1  ;;  %1353 = vst.msk [vmem:[%s2986_s4 + $0x8] sm:$0xf] %vm1349_vm7, %v1818_v24 }
  0x9c   :  { %v446_v43 = vadd.f32 %v2322_v32, %v421_v55  ;;  %1354 = vst.msk [vmem:[%s2986_s4 + $0xc] sm:$0x1] %vm1351_vm8, %v1818_v24 }
  0x9d   :  { %v537_v10 = vpop.f32.mrf.mxu3  ;;  %1350 = vst.msk [vmem:[%s2986_s4] sm:$0xf] %vm1349_vm7, %v1818_v24 }
  0x9e   :  { %v2382_v46 = vadd.f32 %v537_v10, %v445_v14  ;;  %v771_v14 = vshll.u32 %v78_v5, 16  ;;  %v777_v10 = vshll.u32 %v79_v22, 16  ;;  %v789_v5 = vrot.slane %v788_v13, 4  ;;  %1352 = vst.msk [vmem:[%s2986_s4 + $0x4] sm:$0x1] %vm1351_vm8, %v1818_v24 }
  0x9f   :  { %1355 = vst.msk [vmem:[%s2986_s4 + $0x10] sm:$0xf] %vm1349_vm7, %v1818_v24 }
  0xa0   :  { %v2384_v48 = vpop.f32.mrf.mxu0  ;;  %v773_v19 = vrot.slane %v771_v14, 5  ;;  %1356 = vst.msk [vmem:[%s2986_s4 + $0x14] sm:$0x1] %vm1351_vm8, %v1818_v24 }
  0xa1   :  { %v2394_v50 = vpop.f32.mrf.mxu1  ;;  %1357 = vst.msk [vmem:[%s2986_s4 + $0x18] sm:$0xf] %vm1349_vm7, %v1818_v24 }
  0xa2   :  { %1721 = vmatmul.msk.bf16.gmra.mxu3 %vm477_vm6, %v952_v47  ;;  %v774_v42 = vor.u32 %v773_v19, %v770_v6  ;;  %v1191_v47 = vpack.c.b16 %v2149_v23, %v2088_v34  ;;  %v1080_v34 = vunpack.c.l.b16 %v84_v35  ;;  %1358 = vst.msk [vmem:[%s2986_s4 + $0x1c] sm:$0x1] %vm1351_vm8, %v1818_v24 }
  0xa3   :  { %v423_v26 = vpop.f32.mrf.mxu2  ;;  %1359 = vst.msk [vmem:[%s2986_s4 + $0x20] sm:$0xf] %vm1349_vm7, %v1818_v24 }
  0xa4   :  { %v447_v30 = vadd.f32 %v2322_v32, %v423_v26  ;;  %1739 = vmatmul.msk.bf16.gmra.mxu1 %vm477_vm6, %v1190_v11  ;;  %v1705_v11 = vld [vmem:[%s2983_s0 + $0xf8] sm:$0xf]  ;;  %v775_v53 = vrot.slane %v774_v42, 4  ;;  %v779_v26 = vrot.slane %v777_v10, 5  ;;  %1360 = vst.msk [vmem:[%s2986_s4 + $0x24] sm:$0x1] %vm1351_vm8, %v1818_v24 }
  0xa5   :  { %v540_v38 = vpop.f32.mrf.mxu3  ;;  %1361 = vst.msk [vmem:[%s2986_s4 + $0x28] sm:$0xf] %vm1349_vm7, %v1818_v24 }
  0xa6   :  { %v2409_v33 = vadd.f32 %v540_v38, %v446_v43  ;;  %v1069_v38 = vrot.slane %v1068_v8, 4  ;;  %v780_v57 = vsel %vm1899_vm5, %v775_v53, %v779_v26  ;;  %1362 = vst.msk [vmem:[%s2986_s4 + $0x2c] sm:$0x1] %vm1351_vm8, %v1818_v24 }
  0xa7   :  { %v945_v35 = vunpack.c.l.b16 %v780_v57  ;;  %1363 = vst.msk [vmem:[%s2986_s4 + $0x30] sm:$0xf] %vm1349_vm7, %v1818_v24 }
  0xa8   :  { %1713 = vmatmul.msk.bf16.gmra.mxu2 %vm358_vm1, %v1702_v37  ;;  %v2419_v58 = vpop.f32.mrf.mxu0  ;;  %v1706_v37 = vor.u32 %v1813_v16, %v1705_v11  ;;  %v1074_v62 = vsel %vm1899_vm5, %v1069_v38, %v1073_v29  ;;  %1364 = vst.msk [vmem:[%s2986_s4 + $0x34] sm:$0x1] %vm1351_vm8, %v1818_v24  ;;  %v437_v11 = vadd.f32 %v2322_v32, %v2338_v18 }
  0xa9   :  { %v2421_v1 = vpop.f32.mrf.mxu1  ;;  %v1184_v56 = vunpack.c.l.b16 %v1074_v62  ;;  %1365 = vst.msk [vmem:[%s2986_s4 + $0x38] sm:$0xf] %vm1349_vm7, %v1818_v24 }
  0xaa   :  { %1366 = vst.msk [vmem:[%s2986_s4 + $0x3c] sm:$0x1] %vm1351_vm8, %v1818_v24  ;;  %v556_v12 = vadd.f32 %v2372_v45, %v437_v11 }
  0xab   :  { %v426_v60 = vpop.f32.mrf.mxu2  ;;  %1731 = vmatmul.msk.bf16.gmra.mxu0 %vm358_vm1, %v1087_v4  ;;  %v1088_v4 = vpack.c.b16 %v1080_v34, %v349_v9  ;;  %v1192_v39 = vpack.c.b16 %v1184_v56, %v2151_v25  ;;  %1367 = vst.msk [vmem:[%s2986_s4 + $0x40] sm:$0xf] %vm1349_vm7, %v1818_v24  ;;  %v438_v34 = vadd.f32 %v2322_v32, %v2366_v3 }
  0xac   :  { %v448_v31 = vadd.f32 %v2322_v32, %v426_v60  ;;  %1368 = vst.msk [vmem:[%s2986_s4 + $0x44] sm:$0x1] %vm1351_vm8, %v1818_v24 }
  0xad   :  { %v542_v55 = vpop.f32.mrf.mxu3  ;;  %1369 = vst.msk [vmem:[%s2986_s4 + $0x48] sm:$0xf] %vm1349_vm7, %v1818_v24 }
  0xae   :  { %v2431_v43 = vadd.f32 %v542_v55, %v447_v30  ;;  %v793_v30 = vrot.slane %v791_v41, 5  ;;  %v555_v41 = vadd.f32 %v2348_v27, %v436_v20  ;;  %1370 = vst.msk [vmem:[%s2986_s4 + $0x4c] sm:$0x1] %vm1351_vm8, %v1818_v24 }
  0xaf   :  { %1371 = vst.msk [vmem:[%s2986_s4 + $0x50] sm:$0xf] %vm1349_vm7, %v1818_v24 }
  0xb0   :  { %v2436_v40 = vpop.f32.mrf.mxu0  ;;  %v794_v14 = vsel %vm1899_vm5, %v789_v5, %v793_v30  ;;  %1372 = vst.msk [vmem:[%s2986_s4 + $0x54] sm:$0x1] %vm1351_vm8, %v1818_v24 }
  0xb1   :  { %v2446_v49 = vpop.f32.mrf.mxu1  ;;  %v946_v59 = vunpack.c.l.b16 %v794_v14  ;;  %1373 = vst.msk [vmem:[%s2986_s4 + $0x58] sm:$0xf] %vm1349_vm7, %v1818_v24  ;;  %v557_v14 = vadd.f32 %v2394_v50, %v438_v34  ;;  %v1744_v50 = vld [vmem:[%s2986_s4 + $0xc] sm:$0x1] }
  0xb2   :  { %1722 = vmatmul.msk.bf16.gmra.mxu3 %vm477_vm6, %v953_v52  ;;  %1374 = vst.msk [vmem:[%s2986_s4 + $0x5c] sm:$0x1] %vm1351_vm8, %v1818_v24 }
  0xb3   :  { %v428_v44 = vpop.f32.mrf.mxu2  ;;  %v954_v15 = vpack.c.b16 %v946_v59, %v945_v35  ;;  %1375 = vst.msk [vmem:[%s2986_s4 + $0x60] sm:$0xf] %vm1349_vm7, %v1818_v24 }
  0xb4   :  { %v449_v23 = vadd.f32 %v2322_v32, %v428_v44  ;;  %1740 = vmatmul.msk.bf16.gmra.mxu1 %vm477_vm6, %v1191_v47  ;;  %1376 = vst.msk [vmem:[%s2986_s4 + $0x64] sm:$0x1] %vm1351_vm8, %v1818_v24 }
  0xb5   :  { %v545_v28 = vpop.f32.mrf.mxu3  ;;  %1377 = vst.msk [vmem:[%s2986_s4 + $0x68] sm:$0xf] %vm1349_vm7, %v1818_v24 }
  0xb6   :  { %v2451_v54 = vadd.f32 %v545_v28, %v448_v31  ;;  %1378 = vst.msk [vmem:[%s2986_s4 + $0x6c] sm:$0x1] %vm1351_vm8, %v1818_v24 }
  0xb7   :  { %1379 = vst.msk [vmem:[%s2986_s4 + $0x70] sm:$0xf] %vm1349_vm7, %v1818_v24 }
  0xb8   :  { %1714 = vmatmul.msk.bf16.gmra.mxu2 %vm358_vm1, %v1706_v37  ;;  %v2460_v61 = vpop.f32.mrf.mxu0  ;;  %1380 = vst.msk [vmem:[%s2986_s4 + $0x74] sm:$0x1] %vm1351_vm8, %v1818_v24 }
  0xb9   :  { %v2462_v0 = vpop.f32.mrf.mxu1  ;;  %1381 = vst.msk [vmem:[%s2986_s4 + $0x78] sm:$0xf] %vm1349_vm7, %v1818_v24 }
  0xba   :  { %1382 = vst.msk [vmem:[%s2986_s4 + $0x7c] sm:$0x1] %vm1351_vm8, %v1818_v24 }
  0xbb   :  { %v431_v6 = vpop.f32.mrf.mxu2  ;;  %1732 = vmatmul.msk.bf16.gmra.mxu0 %vm358_vm1, %v1088_v4  ;;  %1383 = vst.msk [vmem:[%s2986_s4 + $0x80] sm:$0xf] %vm1349_vm7, %v1818_v24  ;;  %v1742_v4 = vld [vmem:[%s2986_s4 + $0x8] sm:$0xf] }
  0xbc   :  { %v450_v19 = vadd.f32 %v2322_v32, %v431_v6  ;;  %1384 = vst.msk [vmem:[%s2986_s4 + $0x84] sm:$0x1] %vm1351_vm8, %v1818_v24 }
  0xbd   :  { %v547_v21 = vpop.f32.mrf.mxu3  ;;  %1385 = vst.msk [vmem:[%s2986_s4 + $0x88] sm:$0xf] %vm1349_vm7, %v1818_v24 }
  0xbe   :  { %v2468_v9 = vadd.f32 %v547_v21, %v449_v23  ;;  %1386 = vst.msk [vmem:[%s2986_s4 + $0x8c] sm:$0x1] %vm1351_vm8, %v1818_v24 }
  0xbf   :  { %1387 = vst.msk [vmem:[%s2986_s4 + $0x90] sm:$0xf] %vm1349_vm7, %v1818_v24 }
  0xc0   :  { %v2470_v60 = vpop.f32.mrf.mxu0  ;;  %1388 = vst.msk [vmem:[%s2986_s4 + $0x94] sm:$0x1] %vm1351_vm8, %v1818_v24 }
  0xc1   :  { %v2483_v7 = vpop.f32.mrf.mxu1  ;;  %1389 = vst.msk [vmem:[%s2986_s4 + $0x98] sm:$0xf] %vm1349_vm7, %v1818_v24 }
  0xc2   :  { %1723 = vmatmul.msk.bf16.gmra.mxu3 %vm477_vm6, %v954_v15  ;;  %1390 = vst.msk [vmem:[%s2986_s4 + $0x9c] sm:$0x1] %vm1351_vm8, %v1818_v24 }
  0xc3   :  { %v433_v31 = vpop.f32.mrf.mxu2 }
  0xc4   :  { %v451_v25 = vadd.f32 %v2322_v32, %v433_v31  ;;  %1741 = vmatmul.msk.bf16.gmra.mxu1 %vm477_vm6, %v1192_v39 }
  0xc5   :  { %v550_v22 = vpop.f32.mrf.mxu3 }
  0xc6   :  { %v2513_v2 = vadd.f32 %v550_v22, %v450_v19  ;;  %v439_v22 = vadd.f32 %v2322_v32, %v2384_v48 }
  0xc8   :  { %v1125_v55 = vpop.f32.mrf.mxu0 }
  0xc9   :  { %v2530_v52 = vpop.f32.mrf.mxu1 }
  0xcb   :  { %v873_v42 = vpop.f32.mrf.mxu2 }
  0xcc   :  { %v913_v47 = vadd.f32 %v873_v42, %v555_v41 }
  0xcd   :  { %v552_v17 = vpop.f32.mrf.mxu3 }
  0xce   :  { %v2559_v10 = vadd.f32 %v552_v17, %v451_v25 }
  0xd0   :  { %v1127_v13 = vpop.f32.mrf.mxu0 }
  0xd1   :  { %v1229_v36 = vpop.f32.mrf.mxu1 }
  0xd3   :  { %v875_v51 = vpop.f32.mrf.mxu2 }
  0xd4   :  { %v914_v5 = vadd.f32 %v875_v51, %v556_v12  ;;  %v558_v51 = vadd.f32 %v2421_v1, %v439_v22  ;;  %v440_v1 = vadd.f32 %v2322_v32, %v2419_v58 }
  0xd5   :  { %v991_v27 = vpop.f32.mrf.mxu3 }
  0xd6   :  { %v1031_v16 = vadd.f32 %v991_v27, %v913_v47 }
  0xd8   :  { %v1130_v53 = vpop.f32.mrf.mxu0  ;;  %v1165_v8 = vadd.f32 %v1125_v55, %v1031_v16 }
  0xd9   :  { %v1231_v18 = vpop.f32.mrf.mxu1 }
  0xda   :  { %v1269_v44 = vadd.f32 %v1229_v36, %v1165_v8  ;;  %v1746_v8 = vld [vmem:[%s2986_s4 + $0x10] sm:$0xf] }
  0xdb   :  { %v878_v26 = vpop.f32.mrf.mxu2 }
  0xdc   :  { %vm1285_vm9 = vcmp.ge.f32.partialorder %v1269_v44, 0.0  ;;  %v1301_v30 = vmul.f32 0.01, %v1269_v44  ;;  %v915_v21 = vadd.f32 %v878_v26, %v557_v14 }
  0xdd   :  { %v993_v45 = vpop.f32.mrf.mxu3 }
  0xde   :  { %v1317_v23 = vsel %vm1285_vm9, %v1269_v44, %v1301_v30  ;;  %v1032_v37 = vadd.f32 %v993_v45, %v914_v5 }
  0xdf   :  { %v1333_v28 = vpack.c.bf16 %v1317_v23, %v1317_v23 }
  0xe0   :  { %v1132_v38 = vpop.f32.mrf.mxu0  ;;  %v1166_v3 = vadd.f32 %v1127_v13, %v1032_v37 }
  0xe1   :  { %v1392_v29 = vshrl.u32 %v1333_v28, 16  ;;  %v1234_v57 = vpop.f32.mrf.mxu1  ;;  %v1395_v6 = vshll.u32 %v1333_v28, 16 }
  0xe2   :  { %v1270_v35 = vadd.f32 %v1231_v18, %v1166_v3 }
  0xe3   :  { %v880_v59 = vpop.f32.mrf.mxu2  ;;  %v1394_v62 = vrot.slane %v1392_v29, 7 }
  0xe4   :  { %vm1286_vm14 = vcmp.ge.f32.partialorder %v1270_v35, 0.0  ;;  %v1302_v15 = vmul.f32 0.01, %v1270_v35  ;;  %v916_v18 = vadd.f32 %v880_v59, %v558_v51 }
  0xe5   :  { %v1397_v39 = vor.u32 %v1395_v6, %v1394_v62  ;;  %v1398_v31 = vrot.slane %v1394_v62, 4  ;;  %v996_v25 = vpop.f32.mrf.mxu3  ;;  %v1750_v62 = vld [vmem:[%s2986_s4 + $0x18] sm:$0xf] }
  0xe6   :  { %v1318_v55 = vsel %vm1286_vm14, %v1270_v35, %v1302_v15  ;;  %v1033_v42 = vadd.f32 %v996_v25, %v915_v21 }
  0xe7   :  { %v1556_v17 = vsel %vm2677_vm12, %v1397_v39, %v1742_v4  ;;  %v1562_v20 = vsel %vm2690_vm13, %v1398_v31, %v1744_v50  ;;  %v1334_v13 = vpack.c.bf16 %v1318_v55, %v1318_v55 }
  0xe8   :  { %v1135_v36 = vpop.f32.mrf.mxu0  ;;  %1743 = vst [vmem:[%s2986_s4 + $0x8] sm:$0xf] %v1556_v17  ;;  %v1167_v48 = vadd.f32 %v1130_v53, %v1033_v42  ;;  %v1748_v53 = vld [vmem:[%s2986_s4 + $0x14] sm:$0x1] }
  0xe9   :  { %1745 = vst [vmem:[%s2986_s4 + $0xc] sm:$0x1] %v1562_v20  ;;  %v1400_v24 = vshrl.u32 %v1334_v13, 16  ;;  %v1236_v41 = vpop.f32.mrf.mxu1  ;;  %v1403_v16 = vshll.u32 %v1334_v13, 16 }
  0xea   :  { %v1271_v47 = vadd.f32 %v1234_v57, %v1167_v48  ;;  %v559_v57 = vadd.f32 %v2446_v49, %v440_v1  ;;  %v441_v49 = vadd.f32 %v2322_v32, %v2436_v40 }
  0xeb   :  { %v883_v27 = vpop.f32.mrf.mxu2  ;;  %v1402_v11 = vrot.slane %v1400_v24, 7 }
  0xec   :  { %vm1287_vm15 = vcmp.ge.f32.partialorder %v1271_v47, 0.0  ;;  %v1303_v12 = vmul.f32 0.01, %v1271_v47  ;;  %v917_v6 = vadd.f32 %v883_v27, %v559_v57  ;;  %v560_v48 = vadd.f32 %v2462_v0, %v441_v49  ;;  %v1754_v27 = vld [vmem:[%s2986_s4 + $0x20] sm:$0xf] }
  0xed   :  { %v1405_v44 = vor.u32 %v1403_v16, %v1402_v11  ;;  %v1406_v26 = vrot.slane %v1402_v11, 4  ;;  %v998_v5 = vpop.f32.mrf.mxu3  ;;  %v442_v0 = vadd.f32 %v2322_v32, %v2460_v61  ;;  %v1758_v57 = vld [vmem:[%s2986_s4 + $0x28] sm:$0xf] }
  0xee   :  { %v1319_v30 = vsel %vm1287_vm15, %v1271_v47, %v1303_v12  ;;  %v1034_v45 = vadd.f32 %v998_v5, %v916_v18 }
  0xef   :  { %v1565_v34 = vsel %vm2677_vm12, %v1405_v44, %v1746_v8  ;;  %v1568_v23 = vsel %vm2690_vm13, %v1406_v26, %v1748_v53  ;;  %v1335_v37 = vpack.c.bf16 %v1319_v30, %v1319_v30 }
  0xf0   :  { %v1137_v28 = vpop.f32.mrf.mxu0  ;;  %1747 = vst [vmem:[%s2986_s4 + $0x10] sm:$0xf] %v1565_v34  ;;  %v1168_v3 = vadd.f32 %v1132_v38, %v1034_v45  ;;  %v1752_v38 = vld [vmem:[%s2986_s4 + $0x1c] sm:$0x1] }
  0xf1   :  { %1749 = vst [vmem:[%s2986_s4 + $0x14] sm:$0x1] %v1568_v23  ;;  %v1408_v58 = vshrl.u32 %v1335_v37, 16  ;;  %v1239_v29 = vpop.f32.mrf.mxu1  ;;  %v1411_v59 = vshll.u32 %v1335_v37, 16  ;;  %v561_v23 = vadd.f32 %v2483_v7, %v442_v0  ;;  %v443_v7 = vadd.f32 %v2322_v32, %v2470_v60 }
  0xf2   :  { %v1272_v14 = vadd.f32 %v1236_v41, %v1168_v3 }
  0xf3   :  { %v885_v4 = vpop.f32.mrf.mxu2  ;;  %v1410_v35 = vrot.slane %v1408_v58, 7 }
  0xf4   :  { %vm1288_vm0 = vcmp.ge.f32.partialorder %v1272_v14, 0.0  ;;  %v1304_v50 = vmul.f32 0.01, %v1272_v14  ;;  %v918_v11 = vadd.f32 %v885_v4, %v560_v48 }
  0xf5   :  { %v1413_v21 = vor.u32 %v1411_v59, %v1410_v35  ;;  %v1414_v15 = vrot.slane %v1410_v35, 4  ;;  %v1001_v39 = vpop.f32.mrf.mxu3 }
  0xf6   :  { %v1320_v31 = vsel %vm1288_vm0, %v1272_v14, %v1304_v50  ;;  %v1035_v25 = vadd.f32 %v1001_v39, %v917_v6 }
  0xf7   :  { %v1571_v22 = vsel %vm2677_vm12, %v1413_v21, %v1750_v62  ;;  %v1574_v55 = vsel %vm2690_vm13, %v1414_v15, %v1752_v38  ;;  %v1336_v42 = vpack.c.bf16 %v1320_v31, %v1320_v31  ;;  %v562_v31 = vadd.f32 %v2530_v52, %v443_v7  ;;  %v1772_v7 = vld [vmem:[%s2986_s4 + $0x44] sm:$0x1] }
  0xf8   :  { %v1140_v17 = vpop.f32.mrf.mxu0  ;;  %1751 = vst [vmem:[%s2986_s4 + $0x18] sm:$0xf] %v1571_v22  ;;  %v1169_v20 = vadd.f32 %v1135_v36, %v1035_v25  ;;  %v1756_v36 = vld [vmem:[%s2986_s4 + $0x24] sm:$0x1] }
  0xf9   :  { %1753 = vst [vmem:[%s2986_s4 + $0x1c] sm:$0x1] %v1574_v55  ;;  %v1416_v40 = vshrl.u32 %v1336_v42, 16  ;;  %v1241_v13 = vpop.f32.mrf.mxu1  ;;  %v1419_v47 = vshll.u32 %v1336_v42, 16 }
  0xfa   :  { %v1273_v24 = vadd.f32 %v1239_v29, %v1169_v20  ;;  %v1762_v20 = vld [vmem:[%s2986_s4 + $0x30] sm:$0xf] }
  0xfb   :  { %v888_v41 = vpop.f32.mrf.mxu2  ;;  %v1418_v51 = vrot.slane %v1416_v40, 7 }
  0xfc   :  { %vm1289_vm1 = vcmp.ge.f32.partialorder %v1273_v24, 0.0  ;;  %v1305_v16 = vmul.f32 0.01, %v1273_v24  ;;  %v919_v14 = vadd.f32 %v888_v41, %v561_v23 }
  0xfd   :  { %v1421_v8 = vor.u32 %v1419_v47, %v1418_v51  ;;  %v1422_v53 = vrot.slane %v1418_v51, 4  ;;  %v1003_v18 = vpop.f32.mrf.mxu3 }
  0xfe   :  { %v1321_v12 = vsel %vm1289_vm1, %v1273_v24, %v1305_v16  ;;  %v1036_v44 = vadd.f32 %v1003_v18, %v918_v11 }
  0xff   :  { %v1577_v26 = vsel %vm2677_vm12, %v1421_v8, %v1754_v27  ;;  %v1580_v5 = vsel %vm2690_vm13, %v1422_v53, %v1756_v36  ;;  %v1337_v1 = vpack.c.bf16 %v1321_v12, %v1321_v12 }
 0x100   :  { %v1142_v30 = vpop.f32.mrf.mxu0  ;;  %1755 = vst [vmem:[%s2986_s4 + $0x20] sm:$0xf] %v1577_v26  ;;  %v1170_v45 = vadd.f32 %v1137_v28, %v1036_v44  ;;  %v1760_v28 = vld [vmem:[%s2986_s4 + $0x2c] sm:$0x1]  ;;  %v1766_v44 = vld [vmem:[%s2986_s4 + $0x38] sm:$0xf] }
 0x101   :  { %1757 = vst [vmem:[%s2986_s4 + $0x24] sm:$0x1] %v1580_v5  ;;  %v1424_v61 = vshrl.u32 %v1337_v1, 16  ;;  %v1244_v34 = vpop.f32.mrf.mxu1  ;;  %v1427_v29 = vshll.u32 %v1337_v1, 16  ;;  %v1768_v5 = vld [vmem:[%s2986_s4 + $0x3c] sm:$0x1] }
 0x102   :  { %v1274_v37 = vadd.f32 %v1241_v13, %v1170_v45 }
 0x103   :  { %v890_v3 = vpop.f32.mrf.mxu2  ;;  %v1426_v58 = vrot.slane %v1424_v61, 7 }
 0x104   :  { %vm1290_vm2 = vcmp.ge.f32.partialorder %v1274_v37, 0.0  ;;  %v1306_v4 = vmul.f32 0.01, %v1274_v37  ;;  %v920_v40 = vadd.f32 %v890_v3, %v562_v31 }
 0x105   :  { %v1429_v35 = vor.u32 %v1427_v29, %v1426_v58  ;;  %v1430_v59 = vrot.slane %v1426_v58, 4  ;;  %v1006_v62 = vpop.f32.mrf.mxu3 }
 0x106   :  { %v1322_v38 = vsel %vm1290_vm2, %v1274_v37, %v1306_v4  ;;  %v1037_v6 = vadd.f32 %v1006_v62, %v919_v14  ;;  %v1770_v62 = vld [vmem:[%s2986_s4 + $0x40] sm:$0xf] }
 0x107   :  { %v1583_v50 = vsel %vm2677_vm12, %v1429_v35, %v1758_v57  ;;  %v1586_v21 = vsel %vm2690_vm13, %v1430_v59, %v1760_v28  ;;  %v1338_v15 = vpack.c.bf16 %v1322_v38, %v1322_v38 }
 0x108   :  { %1759 = vst [vmem:[%s2986_s4 + $0x28] sm:$0xf] %v1583_v50  ;;  %v1171_v39 = vadd.f32 %v1140_v17, %v1037_v6  ;;  %v1145_v60 = vpop.f32.mrf.mxu0  ;;  %v1764_v17 = vld [vmem:[%s2986_s4 + $0x34] sm:$0x1] }
 0x109   :  { %1761 = vst [vmem:[%s2986_s4 + $0x2c] sm:$0x1] %v1586_v21  ;;  %v1432_v49 = vshrl.u32 %v1338_v15, 16  ;;  %v1246_v32 = vpop.f32.mrf.mxu1  ;;  %v1435_v42 = vshll.u32 %v1338_v15, 16 }
 0x10a   :  { %v1275_v25 = vadd.f32 %v1244_v34, %v1171_v39 }
 0x10b   :  { %v893_v22 = vpop.f32.mrf.mxu2  ;;  %v1434_v55 = vrot.slane %v1432_v49, 7 }
 0x10c   :  { %vm1291_vm3 = vcmp.ge.f32.partialorder %v1275_v25, 0.0  ;;  %v1307_v13 = vmul.f32 0.01, %v1275_v25  ;;  %v921_v1 = vadd.f32 %v893_v22, %v2359_v63 }
 0x10d   :  { %v1437_v48 = vor.u32 %v1435_v42, %v1434_v55  ;;  %v1438_v24 = vrot.slane %v1434_v55, 4  ;;  %v1008_v41 = vpop.f32.mrf.mxu3 }
 0x10e   :  { %v1323_v51 = vsel %vm1291_vm3, %v1275_v25, %v1307_v13  ;;  %v1038_v52 = vadd.f32 %v1008_v41, %v920_v40  ;;  %v1774_v13 = vld [vmem:[%s2986_s4 + $0x58] sm:$0xf] }
 0x10f   :  { %v1589_v47 = vsel %vm2677_vm12, %v1437_v48, %v1762_v20  ;;  %v1592_v27 = vsel %vm2690_vm13, %v1438_v24, %v1764_v17  ;;  %v1339_v36 = vpack.c.bf16 %v1323_v51, %v1323_v51  ;;  %v1776_v48 = vld [vmem:[%s2986_s4 + $0x5c] sm:$0x1] }
 0x110   :  { %1763 = vst [vmem:[%s2986_s4 + $0x30] sm:$0xf] %v1589_v47  ;;  %v1172_v11 = vadd.f32 %v1142_v30, %v1038_v52  ;;  %v1147_v26 = vpop.f32.mrf.mxu0 }
 0x111   :  { %1765 = vst [vmem:[%s2986_s4 + $0x34] sm:$0x1] %v1592_v27  ;;  %v1440_v16 = vshrl.u32 %v1339_v36, 16  ;;  %v1249_v8 = vpop.f32.mrf.mxu1  ;;  %v1443_v12 = vshll.u32 %v1339_v36, 16 }
 0x112   :  { %v1276_v53 = vadd.f32 %v1246_v32, %v1172_v11 }
 0x113   :  { %v895_v18 = vpop.f32.mrf.mxu2  ;;  %v1442_v0 = vrot.slane %v1440_v16, 7 }
 0x114   :  { %vm1292_vm4 = vcmp.ge.f32.partialorder %v1276_v53, 0.0  ;;  %v1308_v30 = vmul.f32 0.01, %v1276_v53  ;;  %v922_v38 = vadd.f32 %v895_v18, %v2382_v46 }
 0x115   :  { %v1445_v45 = vor.u32 %v1443_v12, %v1442_v0  ;;  %v1446_v61 = vrot.slane %v1442_v0, 4  ;;  %v1011_v34 = vpop.f32.mrf.mxu3 }
 0x116   :  { %v1324_v23 = vsel %vm1292_vm4, %v1276_v53, %v1308_v30  ;;  %v1039_v37 = vadd.f32 %v1011_v34, %v921_v1  ;;  %v1780_v30 = vld [vmem:[%s2986_s4 + $0x64] sm:$0x1] }
 0x117   :  { %v1595_v3 = vsel %vm2677_vm12, %v1445_v45, %v1766_v44  ;;  %v1598_v58 = vsel %vm2690_vm13, %v1446_v61, %v1768_v5  ;;  %v1340_v29 = vpack.c.bf16 %v1324_v23, %v1324_v23  ;;  %v1778_v5 = vld [vmem:[%s2986_s4 + $0x60] sm:$0xf] }
 0x118   :  { %1767 = vst [vmem:[%s2986_s4 + $0x38] sm:$0xf] %v1595_v3  ;;  %v1173_v57 = vadd.f32 %v1145_v60, %v1039_v37  ;;  %v1150_v39 = vpop.f32.mrf.mxu0 }
 0x119   :  { %1769 = vst [vmem:[%s2986_s4 + $0x3c] sm:$0x1] %v1598_v58  ;;  %v1448_v63 = vshrl.u32 %v1340_v29, 16  ;;  %v1251_v28 = vpop.f32.mrf.mxu1  ;;  %v1451_v59 = vshll.u32 %v1340_v29, 16 }
 0x11a   :  { %v1277_v14 = vadd.f32 %v1249_v8, %v1173_v57 }
 0x11b   :  { %v898_v4 = vpop.f32.mrf.mxu2  ;;  %v1450_v35 = vrot.slane %v1448_v63, 7 }
 0x11c   :  { %vm1293_vm5 = vcmp.ge.f32.partialorder %v1277_v14, 0.0  ;;  %v1309_v6 = vmul.f32 0.01, %v1277_v14  ;;  %v923_v24 = vadd.f32 %v898_v4, %v2409_v33 }
 0x11d   :  { %v1453_v50 = vor.u32 %v1451_v59, %v1450_v35  ;;  %v1454_v21 = vrot.slane %v1450_v35, 4  ;;  %v1013_v15 = vpop.f32.mrf.mxu3 }
 0x11e   :  { %v1325_v49 = vsel %vm1293_vm5, %v1277_v14, %v1309_v6  ;;  %v1040_v32 = vadd.f32 %v1013_v15, %v922_v38  ;;  %v1784_v38 = vld [vmem:[%s2986_s4 + $0x6c] sm:$0x1] }
 0x11f   :  { %v1601_v60 = vsel %vm2677_vm12, %v1453_v50, %v1770_v62  ;;  %v1604_v31 = vsel %vm2690_vm13, %v1454_v21, %v1772_v7  ;;  %v1341_v25 = vpack.c.bf16 %v1325_v49, %v1325_v49  ;;  %v1782_v62 = vld [vmem:[%s2986_s4 + $0x68] sm:$0xf] }
 0x120   :  { %1771 = vst [vmem:[%s2986_s4 + $0x40] sm:$0xf] %v1601_v60  ;;  %v1174_v46 = vadd.f32 %v1147_v26, %v1040_v32  ;;  %v1152_v53 = vpop.f32.mrf.mxu0 }
 0x121   :  { %1773 = vst [vmem:[%s2986_s4 + $0x44] sm:$0x1] %v1604_v31  ;;  %v1456_v22 = vshrl.u32 %v1341_v25, 16  ;;  %v1254_v55 = vpop.f32.mrf.mxu1  ;;  %v1459_v40 = vshll.u32 %v1341_v25, 16 }
 0x122   :  { %v1278_v42 = vadd.f32 %v1251_v28, %v1174_v46 }
 0x123   :  { %v900_v20 = vpop.f32.mrf.mxu2  ;;  %v1458_v17 = vrot.slane %v1456_v22, 7 }
 0x124   :  { %vm1294_vm6 = vcmp.ge.f32.partialorder %v1278_v42, 0.0  ;;  %v1310_v41 = vmul.f32 0.01, %v1278_v42  ;;  %v924_v45 = vadd.f32 %v900_v20, %v2431_v43 }
 0x125   :  { %v1461_v51 = vor.u32 %v1459_v40, %v1458_v17  ;;  %v1462_v52 = vrot.slane %v1458_v17, 4  ;;  %v1016_v47 = vpop.f32.mrf.mxu3  ;;  %v1786_v17 = vld [vmem:[%s2986_s4 + $0x70] sm:$0xf] }
 0x126   :  { %v1326_v27 = vsel %vm1294_vm6, %v1278_v42, %v1310_v41  ;;  %v1041_v36 = vadd.f32 %v1016_v47, %v923_v24 }
 0x127   :  { %v1607_v11 = vsel %vm2677_vm12, %v1461_v51, %v1774_v13  ;;  %v1610_v16 = vsel %vm2690_vm13, %v1462_v52, %v1776_v48  ;;  %v1342_v8 = vpack.c.bf16 %v1326_v27, %v1326_v27  ;;  %v1788_v13 = vld [vmem:[%s2986_s4 + $0x74] sm:$0x1] }
 0x128   :  { %1775 = vst [vmem:[%s2986_s4 + $0x58] sm:$0xf] %v1607_v11  ;;  %v1175_v33 = vadd.f32 %v1150_v39, %v1041_v36  ;;  %v1155_v14 = vpop.f32.mrf.mxu0 }
 0x129   :  { %1777 = vst [vmem:[%s2986_s4 + $0x5c] sm:$0x1] %v1610_v16  ;;  %v1464_v18 = vshrl.u32 %v1342_v8, 16  ;;  %v1256_v0 = vpop.f32.mrf.mxu1  ;;  %v1467_v26 = vshll.u32 %v1342_v8, 16 }
 0x12a   :  { %v1279_v12 = vadd.f32 %v1254_v55, %v1175_v33 }
 0x12b   :  { %v1466_v44 = vrot.slane %v1464_v18, 7  ;;  %v903_v1 = vpop.f32.mrf.mxu2 }
 0x12c   :  { %vm1295_vm7 = vcmp.ge.f32.partialorder %v1279_v12, 0.0  ;;  %v1311_v61 = vmul.f32 0.01, %v1279_v12  ;;  %v925_v6 = vadd.f32 %v903_v1, %v2451_v54 }
 0x12d   :  { %v1469_v34 = vor.u32 %v1467_v26, %v1466_v44  ;;  %v1470_v23 = vrot.slane %v1466_v44, 4  ;;  %v1018_v37 = vpop.f32.mrf.mxu3  ;;  %v1790_v44 = vld [vmem:[%s2986_s4 + $0x78] sm:$0xf]  ;;  %v1792_v26 = vld [vmem:[%s2986_s4 + $0x7c] sm:$0x1] }
 0x12e   :  { %v1327_v3 = vsel %vm1295_vm7, %v1279_v12, %v1311_v61  ;;  %v1042_v58 = vadd.f32 %v1018_v37, %v924_v45 }
 0x12f   :  { %v1613_v29 = vsel %vm2677_vm12, %v1469_v34, %v1778_v5  ;;  %v1616_v57 = vsel %vm2690_vm13, %v1470_v23, %v1780_v30  ;;  %v1343_v63 = vpack.c.bf16 %v1327_v3, %v1327_v3 }
 0x130   :  { %1779 = vst [vmem:[%s2986_s4 + $0x60] sm:$0xf] %v1613_v29  ;;  %v1176_v28 = vadd.f32 %v1152_v53, %v1042_v58  ;;  %v1157_v40 = vpop.f32.mrf.mxu0 }
 0x131   :  { %1781 = vst [vmem:[%s2986_s4 + $0x64] sm:$0x1] %v1616_v57  ;;  %v1472_v43 = vshrl.u32 %v1343_v63, 16  ;;  %v1475_v59 = vshll.u32 %v1343_v63, 16  ;;  %v1259_v7 = vpop.f32.mrf.mxu1 }
 0x132   :  { %v1280_v4 = vadd.f32 %v1256_v0, %v1176_v28 }
 0x133   :  { %v1474_v35 = vrot.slane %v1472_v43, 7  ;;  %v905_v39 = vpop.f32.mrf.mxu2 }
 0x134   :  { %vm1296_vm8 = vcmp.ge.f32.partialorder %v1280_v4, 0.0  ;;  %v1312_v50 = vmul.f32 0.01, %v1280_v4  ;;  %v926_v48 = vadd.f32 %v905_v39, %v2468_v9 }
 0x135   :  { %v1477_v21 = vor.u32 %v1475_v59, %v1474_v35  ;;  %v1478_v15 = vrot.slane %v1474_v35, 4  ;;  %v1021_v49 = vpop.f32.mrf.mxu3  ;;  %v1794_v35 = vld [vmem:[%s2986_s4 + $0x80] sm:$0xf]  ;;  %v1796_v59 = vld [vmem:[%s2986_s4 + $0x84] sm:$0x1] }
 0x136   :  { %v1328_v32 = vsel %vm1296_vm8, %v1280_v4, %v1312_v50  ;;  %v1043_v60 = vadd.f32 %v1021_v49, %v925_v6 }
 0x137   :  { %v1619_v31 = vsel %vm2677_vm12, %v1477_v21, %v1782_v62  ;;  %v1622_v25 = vsel %vm2690_vm13, %v1478_v15, %v1784_v38  ;;  %v1344_v46 = vpack.c.bf16 %v1328_v32, %v1328_v32 }
 0x138   :  { %1783 = vst [vmem:[%s2986_s4 + $0x68] sm:$0xf] %v1619_v31  ;;  %v1177_v54 = vadd.f32 %v1155_v14, %v1043_v60  ;;  %v1160_v61 = vpop.f32.mrf.mxu0 }
 0x139   :  { %1785 = vst [vmem:[%s2986_s4 + $0x6c] sm:$0x1] %v1622_v25  ;;  %v1480_v22 = vshrl.u32 %v1344_v46, 16  ;;  %v1483_v20 = vshll.u32 %v1344_v46, 16  ;;  %v1261_v52 = vpop.f32.mrf.mxu1 }
 0x13a   :  { %v1281_v55 = vadd.f32 %v1259_v7, %v1177_v54 }
 0x13b   :  { %v1482_v42 = vrot.slane %v1480_v22, 7  ;;  %v908_v53 = vpop.f32.mrf.mxu2 }
 0x13c   :  { %vm1297_vm9 = vcmp.ge.f32.partialorder %v1281_v55, 0.0  ;;  %v1313_v24 = vmul.f32 0.01, %v1281_v55  ;;  %v927_v5 = vadd.f32 %v908_v53, %v2513_v2 }
 0x13d   :  { %v1485_v41 = vor.u32 %v1483_v20, %v1482_v42  ;;  %v1486_v51 = vrot.slane %v1482_v42, 4  ;;  %v1023_v47 = vpop.f32.mrf.mxu3  ;;  %v1800_v42 = vld [vmem:[%s2986_s4 + $0x8c] sm:$0x1] }
 0x13e   :  { %v1329_v27 = vsel %vm1297_vm9, %v1281_v55, %v1313_v24  ;;  %v1044_v36 = vadd.f32 %v1023_v47, %v926_v48  ;;  %v1798_v55 = vld [vmem:[%s2986_s4 + $0x88] sm:$0xf] }
 0x13f   :  { %v1625_v11 = vsel %vm2677_vm12, %v1485_v41, %v1786_v17  ;;  %v1628_v16 = vsel %vm2690_vm13, %v1486_v51, %v1788_v13  ;;  %v1345_v8 = vpack.c.bf16 %v1329_v27, %v1329_v27  ;;  %v1802_v27 = vld [vmem:[%s2986_s4 + $0x90] sm:$0xf] }
 0x140   :  { %1787 = vst [vmem:[%s2986_s4 + $0x70] sm:$0xf] %v1625_v11  ;;  %v1178_v9 = vadd.f32 %v1157_v40, %v1044_v36  ;;  %v1162_v60 = vpop.f32.mrf.mxu0  ;;  %v1804_v36 = vld [vmem:[%s2986_s4 + $0x94] sm:$0x1] }
 0x141   :  { %1789 = vst [vmem:[%s2986_s4 + $0x74] sm:$0x1] %v1628_v16  ;;  %v1488_v33 = vshrl.u32 %v1345_v8, 16  ;;  %v1491_v12 = vshll.u32 %v1345_v8, 16  ;;  %v1264_v57 = vpop.f32.mrf.mxu1 }
 0x142   :  { %v1282_v18 = vadd.f32 %v1261_v52, %v1178_v9 }
 0x143   :  { %v1490_v0 = vrot.slane %v1488_v33, 7  ;;  %v910_v28 = vpop.f32.mrf.mxu2 }
 0x144   :  { %vm1298_vm10 = vcmp.ge.f32.partialorder %v1282_v18, 0.0  ;;  %v1314_v1 = vmul.f32 0.01, %v1282_v18  ;;  %v928_v62 = vadd.f32 %v910_v28, %v2559_v10 }
 0x145   :  { %v1493_v30 = vor.u32 %v1491_v12, %v1490_v0  ;;  %v1494_v45 = vrot.slane %v1490_v0, 4  ;;  %v1026_v34 = vpop.f32.mrf.mxu3 }
 0x146   :  { %v1330_v23 = vsel %vm1298_vm10, %v1282_v18, %v1314_v1  ;;  %v1045_v37 = vadd.f32 %v1026_v34, %v927_v5 }
 0x147   :  { %v1631_v3 = vsel %vm2677_vm12, %v1493_v30, %v1790_v44  ;;  %v1634_v58 = vsel %vm2690_vm13, %v1494_v45, %v1792_v26  ;;  %v1346_v29 = vpack.c.bf16 %v1330_v23, %v1330_v23 }
 0x148   :  { %1791 = vst [vmem:[%s2986_s4 + $0x78] sm:$0xf] %v1631_v3  ;;  %v1179_v2 = vadd.f32 %v1160_v61, %v1045_v37 }
 0x149   :  { %1793 = vst [vmem:[%s2986_s4 + $0x7c] sm:$0x1] %v1634_v58  ;;  %v1496_v63 = vshrl.u32 %v1346_v29, 16  ;;  %v1499_v4 = vshll.u32 %v1346_v29, 16  ;;  %v1266_v25 = vpop.f32.mrf.mxu1 }
 0x14a   :  { %v1283_v43 = vadd.f32 %v1264_v57, %v1179_v2 }
 0x14b   :  { %v1498_v14 = vrot.slane %v1496_v63, 7 }
 0x14c   :  { %vm1299_vm11 = vcmp.ge.f32.partialorder %v1283_v43, 0.0  ;;  %v1315_v7 = vmul.f32 0.01, %v1283_v43 }
 0x14d   :  { %v1501_v38 = vor.u32 %v1499_v4, %v1498_v14  ;;  %v1502_v6 = vrot.slane %v1498_v14, 4  ;;  %v1028_v50 = vpop.f32.mrf.mxu3 }
 0x14e   :  { %v1331_v21 = vsel %vm1299_vm11, %v1283_v43, %v1315_v7  ;;  %v1046_v15 = vadd.f32 %v1028_v50, %v928_v62 }
 0x14f   :  { %v1637_v39 = vsel %vm2677_vm12, %v1501_v38, %v1794_v35  ;;  %v1640_v49 = vsel %vm2690_vm13, %v1502_v6, %v1796_v59  ;;  %v1347_v32 = vpack.c.bf16 %v1331_v21, %v1331_v21 }
 0x150   :  { %1795 = vst [vmem:[%s2986_s4 + $0x80] sm:$0xf] %v1637_v39  ;;  %v1180_v10 = vadd.f32 %v1162_v60, %v1046_v15 }
 0x151   :  { %1797 = vst [vmem:[%s2986_s4 + $0x84] sm:$0x1] %v1640_v49  ;;  %v1504_v31 = vshrl.u32 %v1347_v32, 16  ;;  %v1507_v22 = vshll.u32 %v1347_v32, 16 }
 0x152   :  { %v1284_v46 = vadd.f32 %v1266_v25, %v1180_v10 }
 0x153   :  { %v1506_v54 = vrot.slane %v1504_v31, 7 }
 0x154   :  { %vm1300_vm14 = vcmp.ge.f32.partialorder %v1284_v46, 0.0  ;;  %v1316_v20 = vmul.f32 0.01, %v1284_v46 }
 0x155   :  { %v1509_v17 = vor.u32 %v1507_v22, %v1506_v54  ;;  %v1510_v40 = vrot.slane %v1506_v54, 4 }
 0x156   :  { %v1332_v13 = vsel %vm1300_vm14, %v1284_v46, %v1316_v20 }
 0x157   :  { %v1643_v48 = vsel %vm2677_vm12, %v1509_v17, %v1798_v55  ;;  %v1646_v24 = vsel %vm2690_vm13, %v1510_v40, %v1800_v42  ;;  %v1348_v41 = vpack.c.bf16 %v1332_v13, %v1332_v13 }
 0x158   :  { %1799 = vst [vmem:[%s2986_s4 + $0x88] sm:$0xf] %v1643_v48 }
 0x159   :  { %1801 = vst [vmem:[%s2986_s4 + $0x8c] sm:$0x1] %v1646_v24  ;;  %v1512_v51 = vshrl.u32 %v1348_v41, 16  ;;  %v1515_v47 = vshll.u32 %v1348_v41, 16 }
 0x15b   :  { %v1514_v52 = vrot.slane %v1512_v51, 7 }
 0x15d   :  { %v1517_v11 = vor.u32 %v1515_v47, %v1514_v52  ;;  %v1518_v16 = vrot.slane %v1514_v52, 4 }
 0x15f   :  { %v1649_v8 = vsel %vm2677_vm12, %v1517_v11, %v1802_v27  ;;  %v1652_v53 = vsel %vm2690_vm13, %v1518_v16, %v1804_v36 }
 0x160   :  { %1803 = vst [vmem:[%s2986_s4 + $0x90] sm:$0xf] %v1649_v8 }
 0x161   :  { %1805 = vst [vmem:[%s2986_s4 + $0x94] sm:$0x1] %v1652_v53 }

</bundles_post_ra>
